<compile_context>
chip_gen: v7x
topology: tpu7x:2x2x1
jax: 0.10.0
libtpu: 0.0.40
codegen_flags: <defaults>
</compile_context>

<pallas_src>
import jax
import jax.numpy as jnp
from jax import lax
from jax.experimental import pallas as pl
from jax.experimental.pallas import tpu as pltpu


def _sigmoid(x):
    return 1.0 / (1.0 + jnp.exp(-x))


# -------- kernel A: depthwise 3x3 + BN + ReLU + pointwise 1x1 + BN + ReLU + tile sums --------
def fushead_dwpw_kernel(c_ref, ct_ref, cb_ref, a_ref, at_ref, ab_ref,
                        dwa_ref, dwb_ref, sh1a_ref, sh1b_ref,
                        pwa_ref, pwb_ref, sh2_ref,
                        y_ref, sums_ref):
    _, TH, W, C = c_ref.shape
    rows = TH + 2
    i = pl.program_id(1)
    last = pl.num_programs(1) - 1

    # Halo rows come from clamped (always in-range) HBM loads; zero them (via a 0/1
    # scalar scale) on the true top/bottom image edges -- no pre-padded HBM copies.
    top_m = (i > 0).astype(jnp.bfloat16)
    bot_m = (i < last).astype(jnp.bfloat16)
    top_c = ct_ref[0] * top_m
    bot_c = cb_ref[0] * bot_m
    cm = c_ref[0]

    # (TH+2)-row halo windows for both concat halves [c, c*att], assembled as values
    # (leading-dim concat, no VMEM scratch and no scratch stores).
    xa = jnp.concatenate([top_c, cm, bot_c], axis=0)
    xb = jnp.concatenate([top_c * at_ref[0], cm * a_ref[0], bot_c * ab_ref[0]], axis=0)

    def dw_bn_relu(x, k_ref, shift_ref):
        # W-shifted views via zero-column concats (left/right edges are zero-padded).
        zc = jnp.zeros((rows, 1, C), x.dtype)
        xl = jnp.concatenate([zc, x[:, :W - 1, :]], axis=1)   # value at w-1
        xr = jnp.concatenate([x[:, 1:, :], zc], axis=1)       # value at w+1
        k = k_ref[...]                                        # (3,3,C) bf16, BN1 scale folded
        acc = None
        for dy in range(3):                                   # static taps -> bf16 VPU MACs
            row = (xl[dy:dy + TH] * k[dy, 0]
                   + x[dy:dy + TH] * k[dy, 1]
                   + xr[dy:dy + TH] * k[dy, 2]).astype(jnp.float32)
            acc = row if acc is None else acc + row           # f32 row accumulation
        # folded BN1 shift + ReLU -> bf16 MXU operand with rows flattened for the matmul
        h = jnp.maximum(acc + shift_ref[...], 0.0)
        return h.astype(jnp.bfloat16).reshape(TH * W, C)

    ha = dw_bn_relu(xa, dwa_ref, sh1a_ref)                    # "c" half
    hb = dw_bn_relu(xb, dwb_ref, sh1b_ref)                    # "c*att" half

    # pointwise 1x1 (2C -> C) as two K=C bf16 MXU dots accumulated in f32
    # (no (TH*W, 2C) concat scratch round trip).
    y = jnp.dot(ha, pwa_ref[...], preferred_element_type=jnp.float32)
    y = y + jnp.dot(hb, pwb_ref[...], preferred_element_type=jnp.float32)
    y = jnp.maximum(y + sh2_ref[...], 0.0)                    # folded BN2 shift + ReLU

    y_ref[0] = y.reshape(TH, W, C).astype(y_ref.dtype)
    # per-tile channel sums (f32) for the SE global average pool, duplicated over the
    # 8 sublanes so the output block keeps an (8, C) last-two-dims shape
    sums_ref[0, 0] = jnp.broadcast_to(jnp.sum(y, axis=0, keepdims=True), (8, C))


# -------- kernel B: pure bf16 channel-gating multiply (output aliases the y buffer) --------
def fushead_gate_kernel(y_ref, g_ref, o_ref):
    o_ref[0] = y_ref[0] * g_ref[0, 0]


# ---------------------------------------- JAX glue ----------------------------------------
def bilinear_align_corners_nchw(x, out_hw):
    """F.interpolate(..., mode='bilinear', align_corners=True) — plain JAX glue."""
    N, C, H, W = x.shape
    oh, ow = out_hw
    if (H, W) == (oh, ow):
        return x

    def grid(in_size, out_size):
        if out_size == 1:
            return jnp.zeros((1,), jnp.float32)
        return jnp.arange(out_size, dtype=jnp.float32) * (in_size - 1) / (out_size - 1)

    ys, xs = grid(H, oh), grid(W, ow)
    y0 = jnp.floor(ys).astype(jnp.int32); y1 = jnp.clip(y0 + 1, 0, H - 1); fy = ys - y0
    x0 = jnp.floor(xs).astype(jnp.int32); x1 = jnp.clip(x0 + 1, 0, W - 1); fx = xs - x0
    top = (x[:, :, y0, :] * (1.0 - fy)[None, None, :, None]
           + x[:, :, y1, :] * fy[None, None, :, None])
    out = (top[:, :, :, x0] * (1.0 - fx)[None, None, None, :]
           + top[:, :, :, x1] * fx[None, None, None, :])
    return out


def _vmem_capacity_bytes():
    try:
        return int(pltpu.get_tpu_info().vmem_capacity_bytes)
    except Exception:
        return 64 * 1024 * 1024          # conservative (v7x per-TensorCore)


def _tile_vmem_bytes(th, W, C):
    """Rough per-step VMEM footprint for the dw+pw kernel (no scratch buffers left)."""
    bf, f32 = 2, 4
    blk = th * W * C
    halo = W * C
    io = 2 * 2 * (blk + 2 * halo) * bf          # c & att tiles (+halo rows), double-buffered
    io += 2 * blk * bf                           # y tile, double-buffered
    live = 5 * (th + 2) * W * C * bf             # xa/xb windows + shifted views (transient)
    live += 2 * blk * f32                        # f32 depthwise / pointwise accumulators
    live += 2 * blk * bf                         # ha / hb MXU operands
    live += 4 * C * C * bf + 24 * C * f32        # resident weights (approx)
    return io + live


def _pick_row_tile(H, W, C, budget, cap=None):
    cands = [t for t in range(8, H + 1, 8) if H % t == 0]
    if not cands:
        cands = [t for t in range(1, H + 1) if H % t == 0]
    best = cands[0]
    for t in cands:
        if cap is not None and t > cap:
            continue
        if _tile_vmem_bytes(t, W, C) <= budget:
            best = t
    return best


def fushead_forward(c_nchw, att_nchw, params, eps=1e-5, row_tile=None):
    N, C, H, W = c_nchw.shape
    Cr = params['fc1_w'].shape[0]
    if att_nchw.shape != c_nchw.shape:
        # TODO(synk): bilinear align_corners resize stays in XLA (gather-heavy, no Pallas win)
        att_nchw = bilinear_align_corners_nchw(att_nchw, (H, W))

    cap_bytes = _vmem_capacity_bytes()
    th = _pick_row_tile(H, W, C, int(0.45 * cap_bytes), row_tile)
    nR = H // th
    vmem_limit = int(min(0.85 * cap_bytes,
                         max(2 * _tile_vmem_bytes(th, W, C) + (8 << 20), 32 << 20)))

    # NHWC bf16 across the kernel boundary; NO wrapper-side halo/width padding copies.
    c = jnp.transpose(c_nchw, (0, 2, 3, 1)).astype(jnp.bfloat16)
    att = jnp.transpose(att_nchw, (0, 2, 3, 1)).astype(jnp.bfloat16)

    # ---- fold BN (eval mode) scales directly into the conv weights ----
    dwk = jnp.transpose(params['dw_w'][:, 0], (1, 2, 0))            # (3, 3, 2C)
    s1 = params['bn1_g'] / jnp.sqrt(params['bn1_v'] + eps)
    sh1 = params['bn1_b'] - params['bn1_m'] * s1
    dwk = dwk * s1[None, None, :]
    dwa = dwk[..., :C].astype(jnp.bfloat16)                         # bf16 VPU taps
    dwb = dwk[..., C:].astype(jnp.bfloat16)
    sh1a = sh1[:C].reshape(1, C)
    sh1b = sh1[C:].reshape(1, C)

    pw = jnp.transpose(params['pw_w'][:, :, 0, 0], (1, 0))          # (2C, C)
    s2 = params['bn2_g'] / jnp.sqrt(params['bn2_v'] + eps)
    sh2 = (params['bn2_b'] - params['bn2_m'] * s2).reshape(1, C)
    pwf = pw * s2[None, :]
    pwa = pwf[:C].astype(jnp.bfloat16)                              # (C, C): "c" half
    pwb = pwf[C:].astype(jnp.bfloat16)                              # (C, C): "c*att" half

    w1 = jnp.transpose(params['fc1_w'][:, :, 0, 0], (1, 0))         # (C, Cr)
    b1 = params['fc1_b']
    w2 = jnp.transpose(params['fc2_w'][:, :, 0, 0], (1, 0))         # (Cr, C)
    b2 = params['fc2_b']

    full = lambda shape: pl.BlockSpec(shape, lambda n, i: (0,) * len(shape))
    img_main = pl.BlockSpec((1, th, W, C), lambda n, i: (n, i, 0, 0))
    # 1-row halo blocks with clamped, always in-range element indices (block size 1
    # along the row dim -> block index == element row); kernel zeros the image edges.
    img_top = pl.BlockSpec((1, 1, W, C),
                           lambda n, i: (n, ((i + nR - 1) % nR) * th + th - 1, 0, 0))
    img_bot = pl.BlockSpec((1, 1, W, C),
                           lambda n, i: (n, ((i + 1) % nR) * th, 0, 0))
    tile_y = pl.BlockSpec((1, th, W, C), lambda n, i: (n, i, 0, 0))

    ce_a = pl.CostEstimate(flops=int(N * H * W * C * (36 + 4 * C)),
                           transcendentals=0,
                           bytes_accessed=int(6 * N * H * W * C))
    ce_b = pl.CostEstimate(flops=int(N * H * W * C),
                           transcendentals=0,
                           bytes_accessed=int(4 * N * H * W * C))

    y_bf, tile_sums = pl.pallas_call(
        fushead_dwpw_kernel,
        grid=(N, nR),
        in_specs=[img_main, img_top, img_bot,                 # c: tile + top/bottom halo rows
                  img_main, img_top, img_bot,                 # att: tile + halo rows
                  full((3, 3, C)), full((3, 3, C)),           # folded depthwise taps (bf16)
                  full((1, C)), full((1, C)),                 # BN1 shifts (f32)
                  full((C, C)), full((C, C)), full((1, C))],  # pointwise halves (bf16), BN2 shift
        out_shape=(jax.ShapeDtypeStruct((N, H, W, C), jnp.bfloat16),
                   jax.ShapeDtypeStruct((N, nR, 8, C), jnp.float32)),
        out_specs=(tile_y,
                   pl.BlockSpec((1, 1, 8, C), lambda n, i: (n, i, 0, 0))),
        compiler_params=pltpu.CompilerParams(
            dimension_semantics=("parallel", "parallel"),
            vmem_limit_bytes=vmem_limit),
        cost_estimate=ce_a,
    )(c, c, c, att, att, att, dwa, dwb, sh1a, sh1b, pwa, pwb, sh2)

    # ---- SE gate: pool reduce + fc1/relu/fc2/sigmoid ONCE per image (plain JAX, tiny) ----
    g = jnp.sum(tile_sums, axis=(1, 2)) / (8.0 * H * W)             # (N, C) global mean of y
    hmid = jnp.maximum(g @ w1 + b1[None, :], 0.0)
    gate = _sigmoid(hmid @ w2 + b2[None, :]).astype(jnp.bfloat16).reshape(N, 1, C)

    out_bf = pl.pallas_call(
        fushead_gate_kernel,
        grid=(N, nR),
        in_specs=[tile_y, pl.BlockSpec((1, 1, C), lambda n, i: (n, 0, 0))],
        out_shape=jax.ShapeDtypeStruct((N, H, W, C), jnp.bfloat16),
        out_specs=tile_y,
        input_output_aliases={0: 0},                                 # gate y in place
        compiler_params=pltpu.CompilerParams(
            dimension_semantics=("parallel", "parallel")),
        cost_estimate=ce_b,
    )(y_bf, gate)

    return jnp.transpose(out_bf, (0, 3, 1, 2)).astype(jnp.float32)   # back to NCHW f32


# ---------------------- pure-JAX reference (NCHW, f32, like PyTorch) ----------------------
def fushead_reference(c, att, params, eps=1e-5):
    N, C, H, W = c.shape
    if att.shape != c.shape:
        att = bilinear_align_corners_nchw(att, (H, W))
    hp = lax.Precision.HIGHEST
    x = jnp.concatenate([c, c * att], axis=1)                        # (N, 2C, H, W)
    x = lax.conv_general_dilated(x, params['dw_w'], (1, 1), ((1, 1), (1, 1)),
                                 dimension_numbers=('NCHW', 'OIHW', 'NCHW'),
                                 feature_group_count=2 * C, precision=hp)

    def bn(v, g, b, m, var):
        return ((v - m[None, :, None, None]) / jnp.sqrt(var + eps)[None, :, None, None]
                * g[None, :, None, None] + b[None, :, None, None])

    x = jnp.maximum(bn(x, params['bn1_g'], params['bn1_b'], params['bn1_m'], params['bn1_v']), 0.0)
    x = lax.conv_general_dilated(x, params['pw_w'], (1, 1), 'VALID',
                                 dimension_numbers=('NCHW', 'OIHW', 'NCHW'), precision=hp)
    x = jnp.maximum(bn(x, params['bn2_g'], params['bn2_b'], params['bn2_m'], params['bn2_v']), 0.0)

    g = jnp.mean(x, axis=(2, 3))                                     # (N, C)
    h = jnp.maximum(g @ params['fc1_w'][:, :, 0, 0].T + params['fc1_b'], 0.0)
    w = _sigmoid(h @ params['fc2_w'][:, :, 0, 0].T + params['fc2_b'])
    return x * w[:, :, None, None]


if __name__ == "__main__":
    # small but structurally faithful: inplane divisible by 16 (fc1 reduction)
    N, inplane, H, W = 2, 32, 16, 16
    C, C2, Cr = inplane, 2 * inplane, inplane // 16

    key = jax.random.PRNGKey(0)
    ks = jax.random.split(key, 16)
    f32 = jnp.float32
    params = {
        'dw_w':  0.1 * jax.random.normal(ks[0], (C2, 1, 3, 3), f32),
        'bn1_g': 1.0 + 0.1 * jax.random.normal(ks[1], (C2,), f32),
        'bn1_b': 0.1 * jax.random.normal(ks[2], (C2,), f32),
        'bn1_m': 0.1 * jax.random.normal(ks[3], (C2,), f32),
        'bn1_v': 0.5 + 0.5 * jax.nn.softplus(jax.random.normal(ks[4], (C2,), f32)),
        'pw_w':  0.1 * jax.random.normal(ks[5], (C, C2, 1, 1), f32),
        'bn2_g': 1.0 + 0.1 * jax.random.normal(ks[6], (C,), f32),
        'bn2_b': 0.1 * jax.random.normal(ks[7], (C,), f32),
        'bn2_m': 0.1 * jax.random.normal(ks[8], (C,), f32),
        'bn2_v': 0.5 + 0.5 * jax.nn.softplus(jax.random.normal(ks[9], (C,), f32)),
        'fc1_w': 0.1 * jax.random.normal(ks[10], (Cr, C, 1, 1), f32),
        'fc1_b': 0.1 * jax.random.normal(ks[11], (Cr,), f32),
        'fc2_w': 0.1 * jax.random.normal(ks[12], (C, Cr, 1, 1), f32),
        'fc2_b': 0.1 * jax.random.normal(ks[13], (C,), f32),
    }

    c = jax.random.normal(ks[14], (N, C, H, W), f32)
    att_map = _sigmoid(jax.random.normal(ks[15], (N, C, H, W), f32))

    # row_tile=8 -> 2 row tiles per image: exercises the halo blocks and the two-pass SE.
    fwd = jax.jit(lambda cc, aa: fushead_forward(cc, aa, params, row_tile=8))
    out = jax.block_until_ready(fwd(c, att_map))

    # Reference in f32/HIGHEST, fed the same bf16-rounded inputs the kernel consumes.
    c_ref_in = c.astype(jnp.bfloat16).astype(f32)
    att_ref_in = att_map.astype(jnp.bfloat16).astype(f32)
    ref = fushead_reference(c_ref_in, att_ref_in, params)

    assert out.shape == ref.shape == (N, C, H, W)
    max_err = float(jnp.max(jnp.abs(out - ref)))
    # bf16 activations, bf16 depthwise tap products (per perf review) and bf16 MXU
    # pointwise -> deliberately looser-than-f32 tolerance.
    assert max_err < 3e-2, f"mismatch vs reference: max abs err = {max_err}"
    print("KERNEL_OK")
</pallas_src>

<mosaic_0001>
module attributes {stable_mosaic.version = 11 : i64} {
  func.func @fushead_dwpw_kernel(%arg0: i32, %arg1: i32, %arg2: memref<1x8x16x32xbf16, #tpu.memory_space<vmem>>, %arg3: memref<1x1x16x32xbf16, #tpu.memory_space<vmem>>, %arg4: memref<1x1x16x32xbf16, #tpu.memory_space<vmem>>, %arg5: memref<1x8x16x32xbf16, #tpu.memory_space<vmem>>, %arg6: memref<1x1x16x32xbf16, #tpu.memory_space<vmem>>, %arg7: memref<1x1x16x32xbf16, #tpu.memory_space<vmem>>, %arg8: memref<3x3x32xbf16, #tpu.memory_space<vmem>>, %arg9: memref<3x3x32xbf16, #tpu.memory_space<vmem>>, %arg10: memref<1x32xf32, #tpu.memory_space<vmem>>, %arg11: memref<1x32xf32, #tpu.memory_space<vmem>>, %arg12: memref<32x32xbf16, #tpu.memory_space<vmem>>, %arg13: memref<32x32xbf16, #tpu.memory_space<vmem>>, %arg14: memref<1x32xf32, #tpu.memory_space<vmem>>, %arg15: memref<1x8x16x32xbf16, #tpu.memory_space<vmem>>, %arg16: memref<1x1x8x32xf32, #tpu.memory_space<vmem>>) attributes {dimension_semantics = [#tpu.dimension_semantics<parallel>, #tpu.dimension_semantics<parallel>], iteration_bounds = array<i64: 2, 2>, scalar_prefetch = 0 : i64, scratch_operands = 0 : i64, tpu.core_type = #tpu.core_type<tc>, window_params = [{transform_indices = @transform_0, window_bounds = array<i64: 1, 8, 16, 32>}, {transform_indices = @transform_1, window_bounds = array<i64: 1, 1, 16, 32>}, {transform_indices = @transform_2, window_bounds = array<i64: 1, 1, 16, 32>}, {transform_indices = @transform_3, window_bounds = array<i64: 1, 8, 16, 32>}, {transform_indices = @transform_4, window_bounds = array<i64: 1, 1, 16, 32>}, {transform_indices = @transform_5, window_bounds = array<i64: 1, 1, 16, 32>}, {pipeline_mode = #tpu.pipeline_mode<synchronous>, transform_indices = @transform_6, window_bounds = array<i64: 3, 3, 32>}, {pipeline_mode = #tpu.pipeline_mode<synchronous>, transform_indices = @transform_7, window_bounds = array<i64: 3, 3, 32>}, {pipeline_mode = #tpu.pipeline_mode<synchronous>, transform_indices = @transform_8, window_bounds = array<i64: 1, 32>}, {pipeline_mode = #tpu.pipeline_mode<synchronous>, transform_indices = @transform_9, window_bounds = array<i64: 1, 32>}, {pipeline_mode = #tpu.pipeline_mode<synchronous>, transform_indices = @transform_10, window_bounds = array<i64: 32, 32>}, {pipeline_mode = #tpu.pipeline_mode<synchronous>, transform_indices = @transform_11, window_bounds = array<i64: 32, 32>}, {pipeline_mode = #tpu.pipeline_mode<synchronous>, transform_indices = @transform_12, window_bounds = array<i64: 1, 32>}, {transform_indices = @transform_13, window_bounds = array<i64: 1, 8, 16, 32>}, {transform_indices = @transform_14, window_bounds = array<i64: 1, 1, 8, 32>}]} {
    %c0_i32 = arith.constant 0 : i32
    %0 = arith.cmpi sgt, %arg1, %c0_i32 : i32
    %1 = arith.extui %0 : i1 to i32
    %2 = arith.sitofp %1 : i32 to f32
    %3 = arith.truncf %2 : f32 to bf16
    %c1_i32 = arith.constant 1 : i32
    %4 = arith.cmpi slt, %arg1, %c1_i32 : i32
    %5 = arith.extui %4 : i1 to i32
    %6 = arith.sitofp %5 : i32 to f32
    %7 = arith.truncf %6 : f32 to bf16
    %c0 = arith.constant 0 : index
    %c0_0 = arith.constant 0 : index
    %c0_1 = arith.constant 0 : index
    %c0_2 = arith.constant 0 : index
    %8 = vector.load %arg3[%c0, %c0_0, %c0_1, %c0_2] : memref<1x1x16x32xbf16, #tpu.memory_space<vmem>>, vector<1x1x16x32xbf16>
    %9 = vector.shape_cast %8 : vector<1x1x16x32xbf16> to vector<1x16x32xbf16>
    %10 = vector.broadcast %3 : bf16 to vector<1x16x32xbf16>
    %11 = arith.mulf %9, %10 : vector<1x16x32xbf16>
    %c0_3 = arith.constant 0 : index
    %c0_4 = arith.constant 0 : index
    %c0_5 = arith.constant 0 : index
    %c0_6 = arith.constant 0 : index
    %12 = vector.load %arg4[%c0_3, %c0_4, %c0_5, %c0_6] : memref<1x1x16x32xbf16, #tpu.memory_space<vmem>>, vector<1x1x16x32xbf16>
    %13 = vector.shape_cast %12 : vector<1x1x16x32xbf16> to vector<1x16x32xbf16>
    %14 = vector.broadcast %7 : bf16 to vector<1x16x32xbf16>
    %15 = arith.mulf %13, %14 : vector<1x16x32xbf16>
    %c0_7 = arith.constant 0 : index
    %c0_8 = arith.constant 0 : index
    %c0_9 = arith.constant 0 : index
    %c0_10 = arith.constant 0 : index
    %16 = vector.load %arg2[%c0_7, %c0_8, %c0_9, %c0_10] : memref<1x8x16x32xbf16, #tpu.memory_space<vmem>>, vector<1x8x16x32xbf16>
    %17 = vector.shape_cast %16 : vector<1x8x16x32xbf16> to vector<8x16x32xbf16>
    %18 = tpu.concatenate %11, %17, %15 in 0 : vector<1x16x32xbf16>, vector<8x16x32xbf16>, vector<1x16x32xbf16> -> vector<10x16x32xbf16>
    %c0_11 = arith.constant 0 : index
    %c0_12 = arith.constant 0 : index
    %c0_13 = arith.constant 0 : index
    %c0_14 = arith.constant 0 : index
    %19 = vector.load %arg6[%c0_11, %c0_12, %c0_13, %c0_14] : memref<1x1x16x32xbf16, #tpu.memory_space<vmem>>, vector<1x1x16x32xbf16>
    %20 = vector.shape_cast %19 : vector<1x1x16x32xbf16> to vector<1x16x32xbf16>
    %21 = arith.mulf %11, %20 : vector<1x16x32xbf16>
    %c0_15 = arith.constant 0 : index
    %c0_16 = arith.constant 0 : index
    %c0_17 = arith.constant 0 : index
    %c0_18 = arith.constant 0 : index
    %22 = vector.load %arg5[%c0_15, %c0_16, %c0_17, %c0_18] : memref<1x8x16x32xbf16, #tpu.memory_space<vmem>>, vector<1x8x16x32xbf16>
    %23 = vector.shape_cast %22 : vector<1x8x16x32xbf16> to vector<8x16x32xbf16>
    %24 = arith.mulf %17, %23 : vector<8x16x32xbf16>
    %c0_19 = arith.constant 0 : index
    %c0_20 = arith.constant 0 : index
    %c0_21 = arith.constant 0 : index
    %c0_22 = arith.constant 0 : index
    %25 = vector.load %arg7[%c0_19, %c0_20, %c0_21, %c0_22] : memref<1x1x16x32xbf16, #tpu.memory_space<vmem>>, vector<1x1x16x32xbf16>
    %26 = vector.shape_cast %25 : vector<1x1x16x32xbf16> to vector<1x16x32xbf16>
    %27 = arith.mulf %15, %26 : vector<1x16x32xbf16>
    %28 = tpu.concatenate %21, %24, %27 in 0 : vector<1x16x32xbf16>, vector<8x16x32xbf16>, vector<1x16x32xbf16> -> vector<10x16x32xbf16>
    %cst = arith.constant 0.000000e+00 : bf16
    %29 = vector.broadcast %cst : bf16 to vector<10x1x32xbf16>
    %30 = vector.extract_strided_slice %18 {offsets = [0, 0, 0], sizes = [10, 15, 32], strides = [1, 1, 1]} : vector<10x16x32xbf16> to vector<10x15x32xbf16>
    %31 = tpu.concatenate %29, %30 in 1 : vector<10x1x32xbf16>, vector<10x15x32xbf16> -> vector<10x16x32xbf16>
    %32 = vector.extract_strided_slice %18 {offsets = [0, 1, 0], sizes = [10, 15, 32], strides = [1, 1, 1]} : vector<10x16x32xbf16> to vector<10x15x32xbf16>
    %33 = tpu.concatenate %32, %29 in 1 : vector<10x15x32xbf16>, vector<10x1x32xbf16> -> vector<10x16x32xbf16>
    %c0_23 = arith.constant 0 : index
    %c0_24 = arith.constant 0 : index
    %c0_25 = arith.constant 0 : index
    %34 = vector.load %arg8[%c0_23, %c0_24, %c0_25] : memref<3x3x32xbf16, #tpu.memory_space<vmem>>, vector<3x3x32xbf16>
    %35 = vector.extract_strided_slice %31 {offsets = [0, 0, 0], sizes = [8, 16, 32], strides = [1, 1, 1]} : vector<10x16x32xbf16> to vector<8x16x32xbf16>
    %36 = vector.extract_strided_slice %34 {offsets = [0, 0, 0], sizes = [1, 1, 32], strides = [1, 1, 1]} : vector<3x3x32xbf16> to vector<1x1x32xbf16>
    %37 = vector.shape_cast %36 : vector<1x1x32xbf16> to vector<32xbf16>
    %38 = vector.shape_cast %37 : vector<32xbf16> to vector<1x1x32xbf16>
    %39 = vector.broadcast %38 : vector<1x1x32xbf16> to vector<8x16x32xbf16>
    %40 = arith.mulf %35, %39 : vector<8x16x32xbf16>
    %41 = vector.extract_strided_slice %18 {offsets = [0, 0, 0], sizes = [8, 16, 32], strides = [1, 1, 1]} : vector<10x16x32xbf16> to vector<8x16x32xbf16>
    %42 = vector.extract_strided_slice %34 {offsets = [0, 1, 0], sizes = [1, 1, 32], strides = [1, 1, 1]} : vector<3x3x32xbf16> to vector<1x1x32xbf16>
    %43 = vector.shape_cast %42 : vector<1x1x32xbf16> to vector<32xbf16>
    %44 = vector.shape_cast %43 : vector<32xbf16> to vector<1x1x32xbf16>
    %45 = vector.broadcast %44 : vector<1x1x32xbf16> to vector<8x16x32xbf16>
    %46 = arith.mulf %41, %45 : vector<8x16x32xbf16>
    %47 = arith.addf %40, %46 : vector<8x16x32xbf16>
    %48 = vector.extract_strided_slice %33 {offsets = [0, 0, 0], sizes = [8, 16, 32], strides = [1, 1, 1]} : vector<10x16x32xbf16> to vector<8x16x32xbf16>
    %49 = vector.extract_strided_slice %34 {offsets = [0, 2, 0], sizes = [1, 1, 32], strides = [1, 1, 1]} : vector<3x3x32xbf16> to vector<1x1x32xbf16>
    %50 = vector.shape_cast %49 : vector<1x1x32xbf16> to vector<32xbf16>
    %51 = vector.shape_cast %50 : vector<32xbf16> to vector<1x1x32xbf16>
    %52 = vector.broadcast %51 : vector<1x1x32xbf16> to vector<8x16x32xbf16>
    %53 = arith.mulf %48, %52 : vector<8x16x32xbf16>
    %54 = arith.addf %47, %53 : vector<8x16x32xbf16>
    %55 = arith.extf %54 : vector<8x16x32xbf16> to vector<8x16x32xf32>
    %56 = vector.extract_strided_slice %31 {offsets = [1, 0, 0], sizes = [8, 16, 32], strides = [1, 1, 1]} : vector<10x16x32xbf16> to vector<8x16x32xbf16>
    %57 = vector.extract_strided_slice %34 {offsets = [1, 0, 0], sizes = [1, 1, 32], strides = [1, 1, 1]} : vector<3x3x32xbf16> to vector<1x1x32xbf16>
    %58 = vector.shape_cast %57 : vector<1x1x32xbf16> to vector<32xbf16>
    %59 = vector.shape_cast %58 : vector<32xbf16> to vector<1x1x32xbf16>
    %60 = vector.broadcast %59 : vector<1x1x32xbf16> to vector<8x16x32xbf16>
    %61 = arith.mulf %56, %60 : vector<8x16x32xbf16>
    %62 = vector.extract_strided_slice %18 {offsets = [1, 0, 0], sizes = [8, 16, 32], strides = [1, 1, 1]} : vector<10x16x32xbf16> to vector<8x16x32xbf16>
    %63 = vector.extract_strided_slice %34 {offsets = [1, 1, 0], sizes = [1, 1, 32], strides = [1, 1, 1]} : vector<3x3x32xbf16> to vector<1x1x32xbf16>
    %64 = vector.shape_cast %63 : vector<1x1x32xbf16> to vector<32xbf16>
    %65 = vector.shape_cast %64 : vector<32xbf16> to vector<1x1x32xbf16>
    %66 = vector.broadcast %65 : vector<1x1x32xbf16> to vector<8x16x32xbf16>
    %67 = arith.mulf %62, %66 : vector<8x16x32xbf16>
    %68 = arith.addf %61, %67 : vector<8x16x32xbf16>
    %69 = vector.extract_strided_slice %33 {offsets = [1, 0, 0], sizes = [8, 16, 32], strides = [1, 1, 1]} : vector<10x16x32xbf16> to vector<8x16x32xbf16>
    %70 = vector.extract_strided_slice %34 {offsets = [1, 2, 0], sizes = [1, 1, 32], strides = [1, 1, 1]} : vector<3x3x32xbf16> to vector<1x1x32xbf16>
    %71 = vector.shape_cast %70 : vector<1x1x32xbf16> to vector<32xbf16>
    %72 = vector.shape_cast %71 : vector<32xbf16> to vector<1x1x32xbf16>
    %73 = vector.broadcast %72 : vector<1x1x32xbf16> to vector<8x16x32xbf16>
    %74 = arith.mulf %69, %73 : vector<8x16x32xbf16>
    %75 = arith.addf %68, %74 : vector<8x16x32xbf16>
    %76 = arith.extf %75 : vector<8x16x32xbf16> to vector<8x16x32xf32>
    %77 = arith.addf %55, %76 : vector<8x16x32xf32>
    %78 = vector.extract_strided_slice %31 {offsets = [2, 0, 0], sizes = [8, 16, 32], strides = [1, 1, 1]} : vector<10x16x32xbf16> to vector<8x16x32xbf16>
    %79 = vector.extract_strided_slice %34 {offsets = [2, 0, 0], sizes = [1, 1, 32], strides = [1, 1, 1]} : vector<3x3x32xbf16> to vector<1x1x32xbf16>
    %80 = vector.shape_cast %79 : vector<1x1x32xbf16> to vector<32xbf16>
    %81 = vector.shape_cast %80 : vector<32xbf16> to vector<1x1x32xbf16>
    %82 = vector.broadcast %81 : vector<1x1x32xbf16> to vector<8x16x32xbf16>
    %83 = arith.mulf %78, %82 : vector<8x16x32xbf16>
    %84 = vector.extract_strided_slice %18 {offsets = [2, 0, 0], sizes = [8, 16, 32], strides = [1, 1, 1]} : vector<10x16x32xbf16> to vector<8x16x32xbf16>
    %85 = vector.extract_strided_slice %34 {offsets = [2, 1, 0], sizes = [1, 1, 32], strides = [1, 1, 1]} : vector<3x3x32xbf16> to vector<1x1x32xbf16>
    %86 = vector.shape_cast %85 : vector<1x1x32xbf16> to vector<32xbf16>
    %87 = vector.shape_cast %86 : vector<32xbf16> to vector<1x1x32xbf16>
    %88 = vector.broadcast %87 : vector<1x1x32xbf16> to vector<8x16x32xbf16>
    %89 = arith.mulf %84, %88 : vector<8x16x32xbf16>
    %90 = arith.addf %83, %89 : vector<8x16x32xbf16>
    %91 = vector.extract_strided_slice %33 {offsets = [2, 0, 0], sizes = [8, 16, 32], strides = [1, 1, 1]} : vector<10x16x32xbf16> to vector<8x16x32xbf16>
    %92 = vector.extract_strided_slice %34 {offsets = [2, 2, 0], sizes = [1, 1, 32], strides = [1, 1, 1]} : vector<3x3x32xbf16> to vector<1x1x32xbf16>
    %93 = vector.shape_cast %92 : vector<1x1x32xbf16> to vector<32xbf16>
    %94 = vector.shape_cast %93 : vector<32xbf16> to vector<1x1x32xbf16>
    %95 = vector.broadcast %94 : vector<1x1x32xbf16> to vector<8x16x32xbf16>
    %96 = arith.mulf %91, %95 : vector<8x16x32xbf16>
    %97 = arith.addf %90, %96 : vector<8x16x32xbf16>
    %98 = arith.extf %97 : vector<8x16x32xbf16> to vector<8x16x32xf32>
    %99 = arith.addf %77, %98 : vector<8x16x32xf32>
    %c0_26 = arith.constant 0 : index
    %c0_27 = arith.constant 0 : index
    %100 = vector.load %arg10[%c0_26, %c0_27] : memref<1x32xf32, #tpu.memory_space<vmem>>, vector<1x32xf32>
    %101 = vector.shape_cast %100 : vector<1x32xf32> to vector<1x1x32xf32>
    %102 = vector.broadcast %101 : vector<1x1x32xf32> to vector<8x16x32xf32>
    %103 = arith.addf %99, %102 : vector<8x16x32xf32>
    %cst_28 = arith.constant 0.000000e+00 : f32
    %104 = vector.broadcast %cst_28 : f32 to vector<8x16x32xf32>
    %105 = arith.maximumf %103, %104 : vector<8x16x32xf32>
    %106 = arith.truncf %105 : vector<8x16x32xf32> to vector<8x16x32xbf16>
    %107 = vector.shape_cast %106 : vector<8x16x32xbf16> to vector<128x32xbf16>
    %cst_29 = arith.constant 0.000000e+00 : bf16
    %108 = vector.broadcast %cst_29 : bf16 to vector<10x1x32xbf16>
    %109 = vector.extract_strided_slice %28 {offsets = [0, 0, 0], sizes = [10, 15, 32], strides = [1, 1, 1]} : vector<10x16x32xbf16> to vector<10x15x32xbf16>
    %110 = tpu.concatenate %108, %109 in 1 : vector<10x1x32xbf16>, vector<10x15x32xbf16> -> vector<10x16x32xbf16>
    %111 = vector.extract_strided_slice %28 {offsets = [0, 1, 0], sizes = [10, 15, 32], strides = [1, 1, 1]} : vector<10x16x32xbf16> to vector<10x15x32xbf16>
    %112 = tpu.concatenate %111, %108 in 1 : vector<10x15x32xbf16>, vector<10x1x32xbf16> -> vector<10x16x32xbf16>
    %c0_30 = arith.constant 0 : index
    %c0_31 = arith.constant 0 : index
    %c0_32 = arith.constant 0 : index
    %113 = vector.load %arg9[%c0_30, %c0_31, %c0_32] : memref<3x3x32xbf16, #tpu.memory_space<vmem>>, vector<3x3x32xbf16>
    %114 = vector.extract_strided_slice %110 {offsets = [0, 0, 0], sizes = [8, 16, 32], strides = [1, 1, 1]} : vector<10x16x32xbf16> to vector<8x16x32xbf16>
    %115 = vector.extract_strided_slice %113 {offsets = [0, 0, 0], sizes = [1, 1, 32], strides = [1, 1, 1]} : vector<3x3x32xbf16> to vector<1x1x32xbf16>
    %116 = vector.shape_cast %115 : vector<1x1x32xbf16> to vector<32xbf16>
    %117 = vector.shape_cast %116 : vector<32xbf16> to vector<1x1x32xbf16>
    %118 = vector.broadcast %117 : vector<1x1x32xbf16> to vector<8x16x32xbf16>
    %119 = arith.mulf %114, %118 : vector<8x16x32xbf16>
    %120 = vector.extract_strided_slice %28 {offsets = [0, 0, 0], sizes = [8, 16, 32], strides = [1, 1, 1]} : vector<10x16x32xbf16> to vector<8x16x32xbf16>
    %121 = vector.extract_strided_slice %113 {offsets = [0, 1, 0], sizes = [1, 1, 32], strides = [1, 1, 1]} : vector<3x3x32xbf16> to vector<1x1x32xbf16>
    %122 = vector.shape_cast %121 : vector<1x1x32xbf16> to vector<32xbf16>
    %123 = vector.shape_cast %122 : vector<32xbf16> to vector<1x1x32xbf16>
    %124 = vector.broadcast %123 : vector<1x1x32xbf16> to vector<8x16x32xbf16>
    %125 = arith.mulf %120, %124 : vector<8x16x32xbf16>
    %126 = arith.addf %119, %125 : vector<8x16x32xbf16>
    %127 = vector.extract_strided_slice %112 {offsets = [0, 0, 0], sizes = [8, 16, 32], strides = [1, 1, 1]} : vector<10x16x32xbf16> to vector<8x16x32xbf16>
    %128 = vector.extract_strided_slice %113 {offsets = [0, 2, 0], sizes = [1, 1, 32], strides = [1, 1, 1]} : vector<3x3x32xbf16> to vector<1x1x32xbf16>
    %129 = vector.shape_cast %128 : vector<1x1x32xbf16> to vector<32xbf16>
    %130 = vector.shape_cast %129 : vector<32xbf16> to vector<1x1x32xbf16>
    %131 = vector.broadcast %130 : vector<1x1x32xbf16> to vector<8x16x32xbf16>
    %132 = arith.mulf %127, %131 : vector<8x16x32xbf16>
    %133 = arith.addf %126, %132 : vector<8x16x32xbf16>
    %134 = arith.extf %133 : vector<8x16x32xbf16> to vector<8x16x32xf32>
    %135 = vector.extract_strided_slice %110 {offsets = [1, 0, 0], sizes = [8, 16, 32], strides = [1, 1, 1]} : vector<10x16x32xbf16> to vector<8x16x32xbf16>
    %136 = vector.extract_strided_slice %113 {offsets = [1, 0, 0], sizes = [1, 1, 32], strides = [1, 1, 1]} : vector<3x3x32xbf16> to vector<1x1x32xbf16>
    %137 = vector.shape_cast %136 : vector<1x1x32xbf16> to vector<32xbf16>
    %138 = vector.shape_cast %137 : vector<32xbf16> to vector<1x1x32xbf16>
    %139 = vector.broadcast %138 : vector<1x1x32xbf16> to vector<8x16x32xbf16>
    %140 = arith.mulf %135, %139 : vector<8x16x32xbf16>
    %141 = vector.extract_strided_slice %28 {offsets = [1, 0, 0], sizes = [8, 16, 32], strides = [1, 1, 1]} : vector<10x16x32xbf16> to vector<8x16x32xbf16>
    %142 = vector.extract_strided_slice %113 {offsets = [1, 1, 0], sizes = [1, 1, 32], strides = [1, 1, 1]} : vector<3x3x32xbf16> to vector<1x1x32xbf16>
    %143 = vector.shape_cast %142 : vector<1x1x32xbf16> to vector<32xbf16>
    %144 = vector.shape_cast %143 : vector<32xbf16> to vector<1x1x32xbf16>
    %145 = vector.broadcast %144 : vector<1x1x32xbf16> to vector<8x16x32xbf16>
    %146 = arith.mulf %141, %145 : vector<8x16x32xbf16>
    %147 = arith.addf %140, %146 : vector<8x16x32xbf16>
    %148 = vector.extract_strided_slice %112 {offsets = [1, 0, 0], sizes = [8, 16, 32], strides = [1, 1, 1]} : vector<10x16x32xbf16> to vector<8x16x32xbf16>
    %149 = vector.extract_strided_slice %113 {offsets = [1, 2, 0], sizes = [1, 1, 32], strides = [1, 1, 1]} : vector<3x3x32xbf16> to vector<1x1x32xbf16>
    %150 = vector.shape_cast %149 : vector<1x1x32xbf16> to vector<32xbf16>
    %151 = vector.shape_cast %150 : vector<32xbf16> to vector<1x1x32xbf16>
    %152 = vector.broadcast %151 : vector<1x1x32xbf16> to vector<8x16x32xbf16>
    %153 = arith.mulf %148, %152 : vector<8x16x32xbf16>
    %154 = arith.addf %147, %153 : vector<8x16x32xbf16>
    %155 = arith.extf %154 : vector<8x16x32xbf16> to vector<8x16x32xf32>
    %156 = arith.addf %134, %155 : vector<8x16x32xf32>
    %157 = vector.extract_strided_slice %110 {offsets = [2, 0, 0], sizes = [8, 16, 32], strides = [1, 1, 1]} : vector<10x16x32xbf16> to vector<8x16x32xbf16>
    %158 = vector.extract_strided_slice %113 {offsets = [2, 0, 0], sizes = [1, 1, 32], strides = [1, 1, 1]} : vector<3x3x32xbf16> to vector<1x1x32xbf16>
    %159 = vector.shape_cast %158 : vector<1x1x32xbf16> to vector<32xbf16>
    %160 = vector.shape_cast %159 : vector<32xbf16> to vector<1x1x32xbf16>
    %161 = vector.broadcast %160 : vector<1x1x32xbf16> to vector<8x16x32xbf16>
    %162 = arith.mulf %157, %161 : vector<8x16x32xbf16>
    %163 = vector.extract_strided_slice %28 {offsets = [2, 0, 0], sizes = [8, 16, 32], strides = [1, 1, 1]} : vector<10x16x32xbf16> to vector<8x16x32xbf16>
    %164 = vector.extract_strided_slice %113 {offsets = [2, 1, 0], sizes = [1, 1, 32], strides = [1, 1, 1]} : vector<3x3x32xbf16> to vector<1x1x32xbf16>
    %165 = vector.shape_cast %164 : vector<1x1x32xbf16> to vector<32xbf16>
    %166 = vector.shape_cast %165 : vector<32xbf16> to vector<1x1x32xbf16>
    %167 = vector.broadcast %166 : vector<1x1x32xbf16> to vector<8x16x32xbf16>
    %168 = arith.mulf %163, %167 : vector<8x16x32xbf16>
    %169 = arith.addf %162, %168 : vector<8x16x32xbf16>
    %170 = vector.extract_strided_slice %112 {offsets = [2, 0, 0], sizes = [8, 16, 32], strides = [1, 1, 1]} : vector<10x16x32xbf16> to vector<8x16x32xbf16>
    %171 = vector.extract_strided_slice %113 {offsets = [2, 2, 0], sizes = [1, 1, 32], strides = [1, 1, 1]} : vector<3x3x32xbf16> to vector<1x1x32xbf16>
    %172 = vector.shape_cast %171 : vector<1x1x32xbf16> to vector<32xbf16>
    %173 = vector.shape_cast %172 : vector<32xbf16> to vector<1x1x32xbf16>
    %174 = vector.broadcast %173 : vector<1x1x32xbf16> to vector<8x16x32xbf16>
    %175 = arith.mulf %170, %174 : vector<8x16x32xbf16>
    %176 = arith.addf %169, %175 : vector<8x16x32xbf16>
    %177 = arith.extf %176 : vector<8x16x32xbf16> to vector<8x16x32xf32>
    %178 = arith.addf %156, %177 : vector<8x16x32xf32>
    %c0_33 = arith.constant 0 : index
    %c0_34 = arith.constant 0 : index
    %179 = vector.load %arg11[%c0_33, %c0_34] : memref<1x32xf32, #tpu.memory_space<vmem>>, vector<1x32xf32>
    %180 = vector.shape_cast %179 : vector<1x32xf32> to vector<1x1x32xf32>
    %181 = vector.broadcast %180 : vector<1x1x32xf32> to vector<8x16x32xf32>
    %182 = arith.addf %178, %181 : vector<8x16x32xf32>
    %cst_35 = arith.constant 0.000000e+00 : f32
    %183 = vector.broadcast %cst_35 : f32 to vector<8x16x32xf32>
    %184 = arith.maximumf %182, %183 : vector<8x16x32xf32>
    %185 = arith.truncf %184 : vector<8x16x32xf32> to vector<8x16x32xbf16>
    %186 = vector.shape_cast %185 : vector<8x16x32xbf16> to vector<128x32xbf16>
    %c0_36 = arith.constant 0 : index
    %c0_37 = arith.constant 0 : index
    %187 = vector.load %arg12[%c0_36, %c0_37] : memref<32x32xbf16, #tpu.memory_space<vmem>>, vector<32x32xbf16>
    %cst_38 = arith.constant dense<0.000000e+00> : vector<128x32xf32>
    %188 = tpu.matmul %107, %187, %cst_38 {dimension_numbers = #tpu.dot_dimension_numbers<[1], [0], [0], [1], [0, 0, 1, 1], [], []>} : vector<128x32xbf16>, vector<32x32xbf16>, vector<128x32xf32> -> vector<128x32xf32>
    %c0_39 = arith.constant 0 : index
    %c0_40 = arith.constant 0 : index
    %189 = vector.load %arg13[%c0_39, %c0_40] : memref<32x32xbf16, #tpu.memory_space<vmem>>, vector<32x32xbf16>
    %cst_41 = arith.constant dense<0.000000e+00> : vector<128x32xf32>
    %190 = tpu.matmul %186, %189, %cst_41 {dimension_numbers = #tpu.dot_dimension_numbers<[1], [0], [0], [1], [0, 0, 1, 1], [], []>} : vector<128x32xbf16>, vector<32x32xbf16>, vector<128x32xf32> -> vector<128x32xf32>
    %191 = arith.addf %188, %190 : vector<128x32xf32>
    %c0_42 = arith.constant 0 : index
    %c0_43 = arith.constant 0 : index
    %192 = vector.load %arg14[%c0_42, %c0_43] : memref<1x32xf32, #tpu.memory_space<vmem>>, vector<1x32xf32>
    %193 = vector.broadcast %192 : vector<1x32xf32> to vector<128x32xf32>
    %194 = arith.addf %191, %193 : vector<128x32xf32>
    %cst_44 = arith.constant 0.000000e+00 : f32
    %195 = vector.broadcast %cst_44 : f32 to vector<128x32xf32>
    %196 = arith.maximumf %194, %195 : vector<128x32xf32>
    %197 = vector.shape_cast %196 : vector<128x32xf32> to vector<8x16x32xf32>
    %198 = arith.truncf %197 : vector<8x16x32xf32> to vector<8x16x32xbf16>
    %c0_45 = arith.constant 0 : index
    %c0_46 = arith.constant 0 : index
    %c0_47 = arith.constant 0 : index
    %c0_48 = arith.constant 0 : index
    %199 = vector.load %arg15[%c0_45, %c0_46, %c0_47, %c0_48] : memref<1x8x16x32xbf16, #tpu.memory_space<vmem>>, vector<1x8x16x32xbf16>
    %200 = vector.shape_cast %199 : vector<1x8x16x32xbf16> to vector<8x16x32xbf16>
    %201 = vector.shape_cast %198 : vector<8x16x32xbf16> to vector<1x8x16x32xbf16>
    tpu.vector_store %arg15[%c0_45, %c0_46, %c0_47, %c0_48], %201 {strides = array<i32>} : memref<1x8x16x32xbf16, #tpu.memory_space<vmem>>, vector<1x8x16x32xbf16>,
    %cst_49 = arith.constant dense<0.000000e+00> : vector<32xf32>
    %202 = vector.multi_reduction <add>, %196, %cst_49 [0] : vector<128x32xf32> to vector<32xf32>
    %203 = vector.shape_cast %202 : vector<32xf32> to vector<1x32xf32>
    %204 = vector.shape_cast %203 : vector<1x32xf32> to vector<1x32xf32>
    %205 = vector.broadcast %204 : vector<1x32xf32> to vector<8x32xf32>
    %c0_50 = arith.constant 0 : index
    %c0_51 = arith.constant 0 : index
    %c0_52 = arith.constant 0 : index
    %c0_53 = arith.constant 0 : index
    %206 = vector.load %arg16[%c0_50, %c0_51, %c0_52, %c0_53] : memref<1x1x8x32xf32, #tpu.memory_space<vmem>>, vector<1x1x8x32xf32>
    %207 = vector.shape_cast %206 : vector<1x1x8x32xf32> to vector<8x32xf32>
    %208 = vector.shape_cast %205 : vector<8x32xf32> to vector<1x1x8x32xf32>
    tpu.vector_store %arg16[%c0_50, %c0_51, %c0_52, %c0_53], %208 {strides = array<i32>} : memref<1x1x8x32xf32, #tpu.memory_space<vmem>>, vector<1x1x8x32xf32>,
    return
  }
  func.func @transform_0(%arg0: i32, %arg1: i32) -> (i32, i32, i32, i32) {
    %c0_i32 = arith.constant 0 : i32
    %c0_i32_0 = arith.constant 0 : i32
    %c0_i32_1 = arith.constant 0 : i32
    return %arg0, %arg1, %c0_i32, %c0_i32_0 : i32, i32, i32, i32
  }
  func.func @transform_1(%arg0: i32, %arg1: i32) -> (i32, i32, i32, i32) {
    %c2_i32 = arith.constant 2 : i32
    %0 = arith.addi %arg1, %c2_i32 : i32
    %c1_i32 = arith.constant 1 : i32
    %1 = arith.subi %0, %c1_i32 : i32
    %c2_i32_0 = arith.constant 2 : i32
    %c0_i32 = arith.constant 0 : i32
    %2 = arith.cmpi eq, %c2_i32_0, %c0_i32 : i32
    %c1_i32_1 = arith.constant 1 : i32
    %3 = arith.select %2, %c1_i32_1, %c2_i32_0 : i32
    %4 = arith.remsi %1, %3 : i32
    %c0_i32_2 = arith.constant 0 : i32
    %5 = arith.cmpi ne, %4, %c0_i32_2 : i32
    %c0_i32_3 = arith.constant 0 : i32
    %6 = arith.cmpi slt, %4, %c0_i32_3 : i32
    %c0_i32_4 = arith.constant 0 : i32
    %7 = arith.cmpi slt, %3, %c0_i32_4 : i32
    %8 = arith.xori %6, %7 : i1
    %9 = arith.andi %8, %5 : i1
    %10 = arith.addi %4, %3 : i32
    %11 = arith.select %9, %10, %4 : i32
    %c8_i32 = arith.constant 8 : i32
    %12 = arith.muli %11, %c8_i32 : i32
    %c8_i32_5 = arith.constant 8 : i32
    %13 = arith.addi %12, %c8_i32_5 : i32
    %c1_i32_6 = arith.constant 1 : i32
    %14 = arith.subi %13, %c1_i32_6 : i32
    %c0_i32_7 = arith.constant 0 : i32
    %c0_i32_8 = arith.constant 0 : i32
    %c0_i32_9 = arith.constant 0 : i32
    return %arg0, %14, %c0_i32_7, %c0_i32_8 : i32, i32, i32, i32
  }
  func.func @transform_2(%arg0: i32, %arg1: i32) -> (i32, i32, i32, i32) {
    %c1_i32 = arith.constant 1 : i32
    %0 = arith.addi %arg1, %c1_i32 : i32
    %c2_i32 = arith.constant 2 : i32
    %c0_i32 = arith.constant 0 : i32
    %1 = arith.cmpi eq, %c2_i32, %c0_i32 : i32
    %c1_i32_0 = arith.constant 1 : i32
    %2 = arith.select %1, %c1_i32_0, %c2_i32 : i32
    %3 = arith.remsi %0, %2 : i32
    %c0_i32_1 = arith.constant 0 : i32
    %4 = arith.cmpi ne, %3, %c0_i32_1 : i32
    %c0_i32_2 = arith.constant 0 : i32
    %5 = arith.cmpi slt, %3, %c0_i32_2 : i32
    %c0_i32_3 = arith.constant 0 : i32
    %6 = arith.cmpi slt, %2, %c0_i32_3 : i32
    %7 = arith.xori %5, %6 : i1
    %8 = arith.andi %7, %4 : i1
    %9 = arith.addi %3, %2 : i32
    %10 = arith.select %8, %9, %3 : i32
    %c8_i32 = arith.constant 8 : i32
    %11 = arith.muli %10, %c8_i32 : i32
    %c0_i32_4 = arith.constant 0 : i32
    %c0_i32_5 = arith.constant 0 : i32
    %c0_i32_6 = arith.constant 0 : i32
    return %arg0, %11, %c0_i32_4, %c0_i32_5 : i32, i32, i32, i32
  }
  func.func @transform_3(%arg0: i32, %arg1: i32) -> (i32, i32, i32, i32) {
    %c0_i32 = arith.constant 0 : i32
    %c0_i32_0 = arith.constant 0 : i32
    %c0_i32_1 = arith.constant 0 : i32
    return %arg0, %arg1, %c0_i32, %c0_i32_0 : i32, i32, i32, i32
  }
  func.func @transform_4(%arg0: i32, %arg1: i32) -> (i32, i32, i32, i32) {
    %c2_i32 = arith.constant 2 : i32
    %0 = arith.addi %arg1, %c2_i32 : i32
    %c1_i32 = arith.constant 1 : i32
    %1 = arith.subi %0, %c1_i32 : i32
    %c2_i32_0 = arith.constant 2 : i32
    %c0_i32 = arith.constant 0 : i32
    %2 = arith.cmpi eq, %c2_i32_0, %c0_i32 : i32
    %c1_i32_1 = arith.constant 1 : i32
    %3 = arith.select %2, %c1_i32_1, %c2_i32_0 : i32
    %4 = arith.remsi %1, %3 : i32
    %c0_i32_2 = arith.constant 0 : i32
    %5 = arith.cmpi ne, %4, %c0_i32_2 : i32
    %c0_i32_3 = arith.constant 0 : i32
    %6 = arith.cmpi slt, %4, %c0_i32_3 : i32
    %c0_i32_4 = arith.constant 0 : i32
    %7 = arith.cmpi slt, %3, %c0_i32_4 : i32
    %8 = arith.xori %6, %7 : i1
    %9 = arith.andi %8, %5 : i1
    %10 = arith.addi %4, %3 : i32
    %11 = arith.select %9, %10, %4 : i32
    %c8_i32 = arith.constant 8 : i32
    %12 = arith.muli %11, %c8_i32 : i32
    %c8_i32_5 = arith.constant 8 : i32
    %13 = arith.addi %12, %c8_i32_5 : i32
    %c1_i32_6 = arith.constant 1 : i32
    %14 = arith.subi %13, %c1_i32_6 : i32
    %c0_i32_7 = arith.constant 0 : i32
    %c0_i32_8 = arith.constant 0 : i32
    %c0_i32_9 = arith.constant 0 : i32
    return %arg0, %14, %c0_i32_7, %c0_i32_8 : i32, i32, i32, i32
  }
  func.func @transform_5(%arg0: i32, %arg1: i32) -> (i32, i32, i32, i32) {
    %c1_i32 = arith.constant 1 : i32
    %0 = arith.addi %arg1, %c1_i32 : i32
    %c2_i32 = arith.constant 2 : i32
    %c0_i32 = arith.constant 0 : i32
    %1 = arith.cmpi eq, %c2_i32, %c0_i32 : i32
    %c1_i32_0 = arith.constant 1 : i32
    %2 = arith.select %1, %c1_i32_0, %c2_i32 : i32
    %3 = arith.remsi %0, %2 : i32
    %c0_i32_1 = arith.constant 0 : i32
    %4 = arith.cmpi ne, %3, %c0_i32_1 : i32
    %c0_i32_2 = arith.constant 0 : i32
    %5 = arith.cmpi slt, %3, %c0_i32_2 : i32
    %c0_i32_3 = arith.constant 0 : i32
    %6 = arith.cmpi slt, %2, %c0_i32_3 : i32
    %7 = arith.xori %5, %6 : i1
    %8 = arith.andi %7, %4 : i1
    %9 = arith.addi %3, %2 : i32
    %10 = arith.select %8, %9, %3 : i32
    %c8_i32 = arith.constant 8 : i32
    %11 = arith.muli %10, %c8_i32 : i32
    %c0_i32_4 = arith.constant 0 : i32
    %c0_i32_5 = arith.constant 0 : i32
    %c0_i32_6 = arith.constant 0 : i32
    return %arg0, %11, %c0_i32_4, %c0_i32_5 : i32, i32, i32, i32
  }
  func.func @transform_6(%arg0: i32, %arg1: i32) -> (i32, i32, i32) {
    %c0_i32 = arith.constant 0 : i32
    %c0_i32_0 = arith.constant 0 : i32
    %c0_i32_1 = arith.constant 0 : i32
    %c0_i32_2 = arith.constant 0 : i32
    return %c0_i32, %c0_i32_0, %c0_i32_1 : i32, i32, i32
  }
  func.func @transform_7(%arg0: i32, %arg1: i32) -> (i32, i32, i32) {
    %c0_i32 = arith.constant 0 : i32
    %c0_i32_0 = arith.constant 0 : i32
    %c0_i32_1 = arith.constant 0 : i32
    %c0_i32_2 = arith.constant 0 : i32
    return %c0_i32, %c0_i32_0, %c0_i32_1 : i32, i32, i32
  }
  func.func @transform_8(%arg0: i32, %arg1: i32) -> (i32, i32) {
    %c0_i32 = arith.constant 0 : i32
    %c0_i32_0 = arith.constant 0 : i32
    %c0_i32_1 = arith.constant 0 : i32
    return %c0_i32, %c0_i32_0 : i32, i32
  }
  func.func @transform_9(%arg0: i32, %arg1: i32) -> (i32, i32) {
    %c0_i32 = arith.constant 0 : i32
    %c0_i32_0 = arith.constant 0 : i32
    %c0_i32_1 = arith.constant 0 : i32
    return %c0_i32, %c0_i32_0 : i32, i32
  }
  func.func @transform_10(%arg0: i32, %arg1: i32) -> (i32, i32) {
    %c0_i32 = arith.constant 0 : i32
    %c0_i32_0 = arith.constant 0 : i32
    %c0_i32_1 = arith.constant 0 : i32
    return %c0_i32, %c0_i32_0 : i32, i32
  }
  func.func @transform_11(%arg0: i32, %arg1: i32) -> (i32, i32) {
    %c0_i32 = arith.constant 0 : i32
    %c0_i32_0 = arith.constant 0 : i32
    %c0_i32_1 = arith.constant 0 : i32
    return %c0_i32, %c0_i32_0 : i32, i32
  }
  func.func @transform_12(%arg0: i32, %arg1: i32) -> (i32, i32) {
    %c0_i32 = arith.constant 0 : i32
    %c0_i32_0 = arith.constant 0 : i32
    %c0_i32_1 = arith.constant 0 : i32
    return %c0_i32, %c0_i32_0 : i32, i32
  }
  func.func @transform_13(%arg0: i32, %arg1: i32) -> (i32, i32, i32, i32) {
    %c0_i32 = arith.constant 0 : i32
    %c0_i32_0 = arith.constant 0 : i32
    %c0_i32_1 = arith.constant 0 : i32
    return %arg0, %arg1, %c0_i32, %c0_i32_0 : i32, i32, i32, i32
  }
  func.func @transform_14(%arg0: i32, %arg1: i32) -> (i32, i32, i32, i32) {
    %c0_i32 = arith.constant 0 : i32
    %c0_i32_0 = arith.constant 0 : i32
    %c0_i32_1 = arith.constant 0 : i32
    return %arg0, %arg1, %c0_i32, %c0_i32_0 : i32, i32, i32, i32
  }
}

module attributes {stable_mosaic.version = 11 : i64} {
  func.func @fushead_gate_kernel(%arg0: i32, %arg1: i32, %arg2: memref<1x8x16x32xbf16, #tpu.memory_space<vmem>>, %arg3: memref<1x1x32xbf16, #tpu.memory_space<vmem>>, %arg4: memref<1x8x16x32xbf16, #tpu.memory_space<vmem>>) attributes {dimension_semantics = [#tpu.dimension_semantics<parallel>, #tpu.dimension_semantics<parallel>], iteration_bounds = array<i64: 2, 2>, scalar_prefetch = 0 : i64, scratch_operands = 0 : i64, tpu.core_type = #tpu.core_type<tc>, window_params = [{transform_indices = @transform_0, window_bounds = array<i64: 1, 8, 16, 32>}, {transform_indices = @transform_1, window_bounds = array<i64: 1, 1, 32>}, {transform_indices = @transform_2, window_bounds = array<i64: 1, 8, 16, 32>}]} {
    %c0 = arith.constant 0 : index
    %c0_0 = arith.constant 0 : index
    %c0_1 = arith.constant 0 : index
    %c0_2 = arith.constant 0 : index
    %0 = vector.load %arg2[%c0, %c0_0, %c0_1, %c0_2] : memref<1x8x16x32xbf16, #tpu.memory_space<vmem>>, vector<1x8x16x32xbf16>
    %1 = vector.shape_cast %0 : vector<1x8x16x32xbf16> to vector<8x16x32xbf16>
    %c0_3 = arith.constant 0 : index
    %c0_4 = arith.constant 0 : index
    %c0_5 = arith.constant 0 : index
    %2 = vector.load %arg3[%c0_3, %c0_4, %c0_5] : memref<1x1x32xbf16, #tpu.memory_space<vmem>>, vector<1x1x32xbf16>
    %3 = vector.shape_cast %2 : vector<1x1x32xbf16> to vector<32xbf16>
    %4 = vector.shape_cast %3 : vector<32xbf16> to vector<1x1x32xbf16>
    %5 = vector.broadcast %4 : vector<1x1x32xbf16> to vector<8x16x32xbf16>
    %6 = arith.mulf %1, %5 : vector<8x16x32xbf16>
    %c0_6 = arith.constant 0 : index
    %c0_7 = arith.constant 0 : index
    %c0_8 = arith.constant 0 : index
    %c0_9 = arith.constant 0 : index
    %7 = vector.load %arg4[%c0_6, %c0_7, %c0_8, %c0_9] : memref<1x8x16x32xbf16, #tpu.memory_space<vmem>>, vector<1x8x16x32xbf16>
    %8 = vector.shape_cast %7 : vector<1x8x16x32xbf16> to vector<8x16x32xbf16>
    %9 = vector.shape_cast %6 : vector<8x16x32xbf16> to vector<1x8x16x32xbf16>
    tpu.vector_store %arg4[%c0_6, %c0_7, %c0_8, %c0_9], %9 {strides = array<i32>} : memref<1x8x16x32xbf16, #tpu.memory_space<vmem>>, vector<1x8x16x32xbf16>,
    return
  }
  func.func @transform_0(%arg0: i32, %arg1: i32) -> (i32, i32, i32, i32) {
    %c0_i32 = arith.constant 0 : i32
    %c0_i32_0 = arith.constant 0 : i32
    %c0_i32_1 = arith.constant 0 : i32
    return %arg0, %arg1, %c0_i32, %c0_i32_0 : i32, i32, i32, i32
  }
  func.func @transform_1(%arg0: i32, %arg1: i32) -> (i32, i32, i32) {
    %c0_i32 = arith.constant 0 : i32
    %c0_i32_0 = arith.constant 0 : i32
    %c0_i32_1 = arith.constant 0 : i32
    return %arg0, %c0_i32, %c0_i32_0 : i32, i32, i32
  }
  func.func @transform_2(%arg0: i32, %arg1: i32) -> (i32, i32, i32, i32) {
    %c0_i32 = arith.constant 0 : i32
    %c0_i32_0 = arith.constant 0 : i32
    %c0_i32_1 = arith.constant 0 : i32
    return %arg0, %arg1, %c0_i32, %c0_i32_0 : i32, i32, i32, i32
  }
}

</mosaic_0001>

<bundles_post_ra>
// kernel: _lambda_.3
= control target key start
LH: loop header
LB: loop body
LE: loop exit
PB: predicated region body
PF: predicated region fallthrough
CT: control target
= control target key end

     0   :  { %s482_s9 = smov 0   ;;  %s484_s10 = smov 0   ;;  %s570_s0 = inlined_call_operand.vmem [shape: bf16[2,16,16,32], index: 0, kind: input, shape index: {}, may-alias: {0,2}]   ;;  %s571_s1 = inlined_call_operand.vmem [shape: bf16[2,1,32], index: 1, kind: input, shape index: {}]   ;;  %s572_s2 = inlined_call_operand.vmem [shape: bf16[2,16,16,32], index: 2, kind: output, shape index: {}, may-alias: {0,2}]  }
   0x1   :  { %s486_s11 = smov 0   ;;  %s488_s12 = smov 0  }
   0x2   :  { %s490_s13 = smov 0  }
   0x3 LB: > { %s21_s14 = sadd.s32 1, %s457_s11  ;;  %s24_s15 = sadd.s32 1, %s461_s12  ;;  %s465_s13 = sphi %s490_s13, %s12_s13   ;;  %s461_s12 = sphi %s488_s12, %s576_s12   ;;  %s457_s11 = sphi %s486_s11, %s575_s11   ;;  %s453_s10 = sphi %s484_s10, %s574_s10   ;;  %s449_s9 = sphi %s482_s9, %s573_s9  }
   0x4   : > { %p22_p0 = scmp.ge.s32.totalorder %s21_s14, 2  ;;  %p375_p1 = scmp.ge.s32.totalorder %s465_s13, 1 }
   0x5   : > { %p142_p2 = scmp.lt.s32.totalorder %s465_s13, 5 }
   0x6   : > { %s578_s14 = smov (%p22_p0, %s21_s14), 0  ;;  %s580_s15 = smov (!%p22_p0, %s24_s15), %s461_s12 }
   0x7   : > { %p143_p3 = pnand %p375_p1, %p142_p2  ;;  %p26_p4 = scmp.ge.s32.totalorder %s580_s15, 2 }
   0x8   : > { %s376_s16 = sshll.u32 (!%p143_p3), %s449_s9, 3  ;;  %p178_p5 = scmp.lt.s32.totalorder (!%p143_p3), %s453_s10, 1  ;;  %v222_v0 = vlaneseq (!%p143_p3)  ;;  %vm246_vm0 = vcmask (!%p143_p3), 257024  }
   0x9   : > { %s582_s15 = smov (%p26_p4, %s580_s15), 0  ;;  %146 = sbr.rel (%p143_p3) target bundleno = 37 (0x25), region = 28 }
   0xa   : > { %p180_p6 = scmp.lt.s32.totalorder (!%p143_p3), %s376_s16, 15  ;;  %v223_v1 = vshrl.u32 (!%p143_p3), %v222_v0, 7 }
   0xc   : > { %v224_v2 = vsub.s32 (!%p143_p3), 0, %v223_v1 }
  0x10   : > { %s584_s10 = smov (!%p178_p5, %s453_s10), 1  ;;  %s586_s16 = smov (!%p180_p6, %s376_s16), 15 }
  0x11   : > { %s378_s17 = sshll.u32 %s584_s10, 5  ;;  %s190_s20 = scalar_lea.vmem %s571_s1, %s584_s10 }
  0x12   : > { %s377_s21 = sshll.u32 %s586_s16, 1  ;;  %v218_v3 = vld [vmem:[%s190_s20] sm:$0x1] }
  0x13   : > { %s184_s22 = sadd.s32 %s378_s17, %s377_s21  ;;  %v220_v4 = vpack.i.b16 %v218_v3, %v218_v3 }
  0x14   : > { %s379_s23 = sshll.u32 %s184_s22, 2 }
  0x15   : > { %s186_s26 = scalar_lea.vmem %s570_s0, %s379_s23  ;;  %v225_v5 = vrot.slane %v220_v4, %v224_v2  ;;  %s521_s29 = scalar_lea.vmem %s572_s2, %s379_s23 }
  0x16   : > { %v202_v6 = vld [vmem:[%s186_s26] sm:$0xf]  ;;  %v203_v7 = vld [vmem:[%s186_s26 + $0x4] sm:$0xf]  ;;  %v204_v8 = vld [vmem:[%s186_s26 + $0x8] sm:$0xf] }
  0x17   : > { %v205_v9 = vld [vmem:[%s186_s26 + $0xc] sm:$0xf]  ;;  %v206_v10 = vld [vmem:[%s186_s26 + $0x10] sm:$0xf]  ;;  %v207_v11 = vld [vmem:[%s186_s26 + $0x14] sm:$0xf]  ;;  %v384_v12 = vcombine.low %v225_v5, %v225_v5 }
  0x18   : > { %v208_v13 = vld [vmem:[%s186_s26 + $0x18] sm:$0xf]  ;;  %v209_v14 = vld [vmem:[%s186_s26 + $0x1c] sm:$0xf]  ;;  %v210_v15 = vld [vmem:[%s186_s26 + $0x20] sm:$0xf] }
  0x19   : > { %v211_v16 = vld [vmem:[%s186_s26 + $0x24] sm:$0xf]  ;;  %v212_v17 = vld [vmem:[%s186_s26 + $0x28] sm:$0xf]  ;;  %v213_v18 = vld [vmem:[%s186_s26 + $0x2c] sm:$0xf]  ;;  %v230_v19 = vmul.bf16 %v384_v12, %v202_v6  ;;  %v231_v20 = vmul.bf16 %v384_v12, %v203_v7  ;;  %v232_v21 = vmul.bf16 %v384_v12, %v204_v8  ;;  %v233_v22 = vmul.bf16 %v384_v12, %v205_v9 }
  0x1a   : > { %v214_v23 = vld [vmem:[%s186_s26 + $0x30] sm:$0xf]  ;;  %v215_v24 = vld [vmem:[%s186_s26 + $0x34] sm:$0xf]  ;;  %v216_v25 = vld [vmem:[%s186_s26 + $0x38] sm:$0xf]  ;;  %v234_v26 = vmul.bf16 %v384_v12, %v206_v10  ;;  %v235_v27 = vmul.bf16 %v384_v12, %v207_v11  ;;  %v236_v28 = vmul.bf16 %v384_v12, %v208_v13  ;;  %v237_v29 = vmul.bf16 %v384_v12, %v209_v14 }
  0x1b   : > { %v217_v30 = vld [vmem:[%s186_s26 + $0x3c] sm:$0xf]  ;;  %v238_v31 = vmul.bf16 %v384_v12, %v210_v15  ;;  %v239_v32 = vmul.bf16 %v384_v12, %v211_v16  ;;  %v240_v33 = vmul.bf16 %v384_v12, %v212_v17  ;;  %v241_v34 = vmul.bf16 %v384_v12, %v213_v18 }
  0x1c   : > { %v242_v35 = vmul.bf16 %v384_v12, %v214_v23  ;;  %v243_v36 = vmul.bf16 %v384_v12, %v215_v24  ;;  %v244_v37 = vmul.bf16 %v384_v12, %v216_v25  ;;  %v245_v38 = vmul.bf16 %v384_v12, %v217_v30  ;;  %247 = vst.msk [vmem:[%s521_s29] sm:$0xf] %vm246_vm0, %v230_v19 }
  0x1d   : > { %248 = vst.msk [vmem:[%s521_s29 + $0x4] sm:$0xf] %vm246_vm0, %v231_v20  ;;  %249 = vst.msk [vmem:[%s521_s29 + $0x8] sm:$0xf] %vm246_vm0, %v232_v21 }
  0x1e   : > { %250 = vst.msk [vmem:[%s521_s29 + $0xc] sm:$0xf] %vm246_vm0, %v233_v22  ;;  %251 = vst.msk [vmem:[%s521_s29 + $0x10] sm:$0xf] %vm246_vm0, %v234_v26 }
  0x1f   : > { %252 = vst.msk [vmem:[%s521_s29 + $0x14] sm:$0xf] %vm246_vm0, %v235_v27  ;;  %253 = vst.msk [vmem:[%s521_s29 + $0x18] sm:$0xf] %vm246_vm0, %v236_v28 }
  0x20   : > { %254 = vst.msk [vmem:[%s521_s29 + $0x1c] sm:$0xf] %vm246_vm0, %v237_v29  ;;  %255 = vst.msk [vmem:[%s521_s29 + $0x20] sm:$0xf] %vm246_vm0, %v238_v31 }
  0x21   : > { %256 = vst.msk [vmem:[%s521_s29 + $0x24] sm:$0xf] %vm246_vm0, %v239_v32  ;;  %257 = vst.msk [vmem:[%s521_s29 + $0x28] sm:$0xf] %vm246_vm0, %v240_v33 }
  0x22   : > { %258 = vst.msk [vmem:[%s521_s29 + $0x2c] sm:$0xf] %vm246_vm0, %v241_v34  ;;  %259 = vst.msk [vmem:[%s521_s29 + $0x30] sm:$0xf] %vm246_vm0, %v242_v35 }
  0x23   : > { %260 = vst.msk [vmem:[%s521_s29 + $0x34] sm:$0xf] %vm246_vm0, %v243_v36  ;;  %261 = vst.msk [vmem:[%s521_s29 + $0x38] sm:$0xf] %vm246_vm0, %v244_v37 }
  0x24   : > { %262 = vst.msk [vmem:[%s521_s29 + $0x3c] sm:$0xf] %vm246_vm0, %v245_v38 }
  0x25 PF: > { %s12_s13 = sadd.s32 1, %s465_s13   ;;  %s573_s9 = smov %s457_s11 }
  0x26   : > { %p9_p7 = scmp.ge.s32.totalorder %s12_s13, 6   ;;  %s574_s10 = smov %s461_s12 }
  0x27   : > { %s575_s11 = smov %s578_s14  ;;  %s576_s12 = smov %s582_s15 }
  0x28   :  { %11 = sbr.rel (!%p9_p7) target bundleno = 3 (0x3), region = 61 }

// kernel: _lambda_.2
= control target key start
LH: loop header
LB: loop body
LE: loop exit
PB: predicated region body
PF: predicated region fallthrough
CT: control target
= control target key end

     0   :  { %s3686_s29 = smov 0   ;;  %s3688_s30 = smov 0   ;;  %s4790_s0 = inlined_call_operand.vmem [shape: bf16[2,16,16,32], index: 0, kind: input, shape index: {}, may-alias: {0,1,2}]   ;;  %s4791_s1 = inlined_call_operand.vmem [shape: bf16[2,16,16,32], index: 1, kind: input, shape index: {}, may-alias: {0,1,2}]   ;;  %s4792_s2 = inlined_call_operand.vmem [shape: bf16[2,16,16,32], index: 2, kind: input, shape index: {}, may-alias: {0,1,2}]   ;;  %s4793_s3 = inlined_call_operand.vmem [shape: bf16[2,16,16,32], index: 3, kind: input, shape index: {}, may-alias: {3,4,5}]   ;;  %s4794_s4 = inlined_call_operand.vmem [shape: bf16[2,16,16,32], index: 4, kind: input, shape index: {}, may-alias: {3,4,5}]   ;;  %s4795_s5 = inlined_call_operand.vmem [shape: bf16[2,16,16,32], index: 5, kind: input, shape index: {}, may-alias: {3,4,5}]   ;;  %s4796_s6 = inlined_call_operand.vmem [shape: bf16[3,3,32], index: 6, kind: input, shape index: {}]   ;;  %s4797_s7 = inlined_call_operand.vmem [shape: bf16[3,3,32], index: 7, kind: input, shape index: {}]   ;;  %s4798_s8 = inlined_call_operand.vmem [shape: f32[1,32], index: 8, kind: input, shape index: {}]   ;;  %s4799_s9 = inlined_call_operand.vmem [shape: f32[1,32], index: 9, kind: input, shape index: {}]   ;;  %s4800_s10 = inlined_call_operand.vmem [shape: bf16[32,32], index: 10, kind: input, shape index: {}]   ;;  %s4801_s11 = inlined_call_operand.vmem [shape: bf16[32,32], index: 11, kind: input, shape index: {}]   ;;  %s4802_s12 = inlined_call_operand.vmem [shape: f32[1,32], index: 12, kind: input, shape index: {}]   ;;  %s4803_s13 = inlined_call_operand.vmem [shape: bf16[2,16,16,32], index: 13, kind: output, shape index: {0}]   ;;  %s4804_s14 = inlined_call_operand.vmem [shape: f32[2,2,8,32], index: 14, kind: output, shape index: {1}]  }
   0x1   :  { %4819 = sst [smem:[#allocation9_spill]] %s4790_s0  ;;  %s3690_s15 = smov 0  }
   0x2   :  { %4820 = sst [smem:[#allocation10_spill]] %s4791_s1  ;;  %s3692_s16 = smov 0  }
   0x3   :  { %4821 = sst [smem:[#allocation11_spill]] %s4800_s10  ;;  %s3694_s17 = smov 0  }
   0x4   :  { %4822 = sst [smem:[#allocation12_spill]] %s4801_s11 }
   0x5 LB: > { %s34_s18 = sadd.s32 1, %s3601_s15  ;;  %s37_s19 = sadd.s32 1, %s3605_s16  ;;  %s3609_s17 = sphi %s3694_s17, %s25_s17   ;;  %s3605_s16 = sphi %s3692_s16, %s4858_s16   ;;  %s3601_s15 = sphi %s3690_s15, %s4857_s15   ;;  %s3597_s30 = sphi %s3688_s30, %s4856_s30   ;;  %s3593_s29 = sphi %s3686_s29, %s4855_s29  }
   0x6   : > { %p35_p0 = scmp.ge.s32.totalorder %s34_s18, 2  ;;  %p3267_p1 = scmp.ge.s32.totalorder %s3609_s17, 1 }
   0x7   : > { %p753_p2 = scmp.lt.s32.totalorder %s3609_s17, 5 }
   0x8   : > { %s4860_s18 = smov (%p35_p0, %s34_s18), 0  ;;  %s4862_s19 = smov (!%p35_p0, %s37_s19), %s3605_s16 }
   0x9   : > { %p754_p3 = pnand %p3267_p1, %p753_p2  ;;  %p39_p4 = scmp.ge.s32.totalorder %s4862_s19, 2 }
   0xb   : > { %s4864_s19 = smov (%p39_p4, %s4862_s19), 0  ;;  %757 = sbr.rel (%p754_p3) target bundleno = 485 (0x1e5), region = 72 }
   0xc   : > { %4823 = sst [smem:[#allocation2_spill]] %s4864_s19 }
  0x12   : > { %s4824_s10 = sld [smem:[#allocation11_spill]]  ;;  %s3268_s22 = sshll.u32 %s3593_s29, 3  ;;  %v1405_v1 = vlaneseq  ;;  %vm1344_vm0 = vsmask.f32 256  ;;  %vm1343_vm1 = vcmask 1040384   ;;  %vm1386_vm2 = vcmask 1047552  }
  0x13   : > { %s4825_s11 = sld [smem:[#allocation12_spill]]  ;;  %p922_p5 = scmp.lt.s32.totalorder %s3597_s30, 1  ;;  %v1399_v6 = vld [vmem:[%s4796_s6] sm:$0x3]  ;;  %v1400_v7 = vld [vmem:[%s4796_s6 + $0x2] sm:$0x3]  ;;  %vm3830_vm4 = vmand %vm1343_vm1, %vm1344_vm0 }
  0x14   : > { %p924_p6 = scmp.lt.s32.totalorder %s3268_s22, 15  ;;  %v1406_v5 = vshrl.u32 %v1405_v1, 7  ;;  %s3737_s21 = sadd.s32 1, %s3593_s29  ;;  %v1401_v8 = vld [vmem:[%s4796_s6 + $0x4] sm:$0x3]  ;;  %v1403_v9 = vpack.i.b16 %v1399_v6, %v1399_v6  ;;  %v1417_v11 = vshrl.u32 %v1399_v6, 16  ;;  %v1537_v13 = vpack.i.b16 %v1400_v7, %v1400_v7 }
  0x15   : > { %s4866_s30 = smov (!%p922_p5, %s3597_s30), 1  ;;  %p933_p7 = scmp.lt.s32.totalorder %s3737_s21, 0  ;;  %vm1387_vm3 = vsmask.f32 7424  ;;  %v1551_v14 = vshrl.u32 %v1400_v7, 16  ;;  %v1687_v15 = vpack.i.b16 %v1401_v8, %v1401_v8  ;;  %v1701_v16 = vshrl.u32 %v1401_v8, 16 }
  0x16   : > { %s4868_s22 = smov (!%p924_p6, %s3268_s22), 15  ;;  %s3734_s20 = sshll.u32 %s4866_s30, 5  ;;  %v3751_v10 = vsub.s32 0, %v1406_v5  ;;  %v3753_v12 = vsub.s32 1, %v1406_v5  ;;  %v1418_v18 = vpack.i.b16 %v1417_v11, %v1417_v11  ;;  %v3776_v21 = vld [vmem:[%s4797_s7] sm:$0x3]  ;;  %vm3838_vm5 = vmand %vm1386_vm2, %vm1387_vm3 }
  0x17   : > { %s3269_s25 = sshll.u32 %s4868_s22, 1  ;;  %s934_s19 = ssub.s32 0, %s3737_s21  ;;  %v1552_v24 = vpack.i.b16 %v1551_v14, %v1551_v14  ;;  %v1702_v27 = vpack.i.b16 %v1701_v16, %v1701_v16  ;;  %v3809_v34 = vpack.i.b16 %v3776_v21, %v3776_v21  ;;  %v2081_v39 = vshrl.u32 %v3776_v21, 16 }
  0x18   : > { %v3557_v0 = vld [vmem:[%s4824_s10] sm:$0xff]   ;;  %v3559_v3 = vld [vmem:[%s4824_s10 + $0x8] sm:$0xff]   ;;  %s3272_s23 = smin.u32 %s934_s19, %s3737_s21  ;;  %s4826_s0 = sld [smem:[#allocation9_spill]]  ;;  %v3765_v17 = vrot.slane %v1403_v9, %v3751_v10  ;;  %v3768_v19 = vrot.slane %v1403_v9, %v3753_v12  ;;  %v3771_v20 = vrot.slane %v1537_v13, %v3751_v10  ;;  %v3785_v25 = vrot.slane %v1537_v13, %v3753_v12 }
  0x19   : > { %v3558_v2 = vld [vmem:[%s4825_s11] sm:$0xff]   ;;  %3481 = vmatprep.subr.bf16.mxu0 %v3557_v0  ;;  %v3560_v4 = vld [vmem:[%s4825_s11 + $0x8] sm:$0xff]   ;;  %s928_s11 = sadd.s32 %s3734_s20, %s3269_s25  ;;  %s936_s26 = sand.u32 1, %s3272_s23   ;;  %v3788_v26 = vrot.slane %v1687_v15, %v3751_v10  ;;  %v1423_v31 = vrot.slane %v1418_v18, %v3751_v10  ;;  %v3802_v32 = vrot.slane %v1687_v15, %v3753_v12  ;;  %v1557_v36 = vrot.slane %v1552_v24, %v3751_v10 }
  0x1a   : > { %3482 = vmatpush3.bf16.msra.mxu0 %v3557_v0  ;;  %3461 = vmatprep.subr.bf16.mxu1 %v3558_v2  ;;  %s3755_s22 = sshll.u32 %s928_s11, 2  ;;  %s937_s27 = ssub.s32 0, %s936_s26  ;;  %v1707_v37 = vrot.slane %v1702_v27, %v3751_v10  ;;  %vm2567_vm6 = vcmask 261120   ;;  %vm2925_vm7 = vcmask 257024  }
  0x1b   : > { %3462 = vmatpush3.bf16.msra.mxu1 %v3558_v2  ;;  %3483 = vmatprep.subr.bf16.mxu0 %v3559_v3  ;;  %s4870_s27 = smov (!%p933_p7, %s937_s27), %s936_s26  ;;  %4827 = vst [vmem:[#allocation3_spill] sm:$0xff] %v3802_v32  ;;  %p1115_p8 = scmp.gt.s32.totalorder %s3593_s29, 0  ;;  %v3820_v42 = vcombine.low %v1423_v31, %v1423_v31  ;;  %v3824_v46 = vcombine.low %v1557_v36, %v1557_v36 }
  0x1c   : > { %3463 = vmatprep.subr.bf16.mxu1 %v3560_v4  ;;  %p3274_p9 = scmp.lt.s32.totalorder %s4870_s27, 0  ;;  %s943_s21 = sadd.s32 2, %s4870_s27  ;;  %v3826_v47 = vcombine.low %v1707_v37, %v1707_v37 }
  0x1d   : > { %s1116_s28 = scalar_select %p1115_p8, 1, 0 }
  0x1e   : > { %3484 = vmatpush3.bf16.msra.mxu0 %v3559_v3  ;;  %s3762_s25 = scalar_lea.vmem %s4826_s0, %s3755_s22  ;;  %s4872_s21 = smov (!%p3274_p9, %s943_s21), %s4870_s27 }
  0x1f   : > { %3464 = vmatpush3.bf16.msra.mxu1 %v3560_v4  ;;  %v3779_v22 = vld [vmem:[%s3762_s25] sm:$0xf]  ;;  %v3782_v23 = vld [vmem:[%s3762_s25 + $0x4] sm:$0xf]  ;;  %v3793_v28 = vld [vmem:[%s3762_s25 + $0x8] sm:$0xf]  ;;  %s3834_s23 = scvt.s32.f32 %s1116_s28  ;;  %s3863_s19 = scalar_lea.vmem %s4793_s3, %s3755_s22 }
  0x20   : > { %v3796_v29 = vld [vmem:[%s3762_s25 + $0xc] sm:$0xf]  ;;  %v3311_v30 = vcombine.low %v3779_v22, %v3782_v23  ;;  %v3805_v33 = vld [vmem:[%s3762_s25 + $0x10] sm:$0xf]  ;;  %v3817_v38 = vld [vmem:[%s3762_s25 + $0x14] sm:$0xf]  ;;  %v1562_v56 = vmul.bf16 %v3824_v46, %v3779_v22  ;;  %v1563_v57 = vmul.bf16 %v3824_v46, %v3782_v23  ;;  %v1712_v60 = vmul.bf16 %v3826_v47, %v3793_v28 }
  0x21   : > { %v3312_v35 = vcombine.low %v3793_v28, %v3796_v29  ;;  %v3313_v43 = vcombine.low %v3805_v33, %v3817_v38  ;;  %s3846_s10 = sshll.u32 %s4872_s21, 3  ;;  %v1713_v61 = vmul.bf16 %v3826_v47, %v3796_v29  ;;  %s1120_s27 = sshrl.u32 %s3834_s23, 16  ;;  %v1430_v36 = vmul.bf16 %v3820_v42, %v3779_v22 }
  0x22   : > { %v1271_v40 = vshrl.u32 %v3311_v30, 16  ;;  %v1274_v41 = vshll.u32 %v3311_v30, 16  ;;  %s946_s24 = sadd.s32 7, %s3846_s10  ;;  %v3330_v0 = vcombine.low %v1562_v56, %v1563_v57  ;;  %p1119_p11 = scmp.ne.f32.partialorder %s3834_s23, %s3834_s23  ;;  %v1177_v56 = vld [vmem:[%s3863_s19] sm:$0xf] }
  0x23   : > { %v1278_v44 = vshrl.u32 %v3312_v35, 16  ;;  %v1281_v45 = vshll.u32 %v3312_v35, 16  ;;  %v1285_v51 = vshrl.u32 %v3313_v43, 16  ;;  %v1288_v52 = vshll.u32 %v3313_v43, 16  ;;  %p949_p10 = scmp.lt.s32.totalorder %s946_s24, 15  ;;  %s1121_s21 = sand.u32 1, %s1120_s27 }
  0x24   : > { %v1273_v48 = vrot.slane %v1271_v40, 7  ;;  %v1358_v50 = vrot.slane %v1274_v41, 1  ;;  %v3339_v4 = vcombine.low %v1712_v60, %v1713_v61  ;;  %s1122_s26 = sadd.s32 32767, %s1121_s21  ;;  %v1565_v43 = vmul.bf16 %v3824_v46, %v3796_v29  ;;  %s4832_s1 = sld [smem:[#allocation10_spill]]  ;;  %v1178_v57 = vld [vmem:[%s3863_s19 + $0x4] sm:$0xf] }
  0x25   : > { %v1280_v53 = vrot.slane %v1278_v44, 7  ;;  %v1360_v54 = vrot.slane %v1281_v45, 1  ;;  %v1287_v1 = vrot.slane %v1285_v51, 7  ;;  %v1362_v5 = vrot.slane %v1288_v52, 1  ;;  %s4874_s24 = smov (!%p949_p10, %s946_s24), 15  ;;  %s1123_s27 = sadd.s32 %s1122_s26, %s3834_s23 }
  0x26   : > { %v1276_v58 = vor.u32 %v1274_v41, %v1273_v48  ;;  %v1359_v59 = vor.u32 %v1358_v50, %v1271_v40  ;;  %s3276_s28 = sshll.u32 %s4874_s24, 1  ;;  %v1431_v40 = vmul.bf16 %v3820_v42, %v3782_v23  ;;  %v1564_v41 = vmul.bf16 %v3824_v46, %v3793_v28  ;;  %s1124_s21 = sand.u32 4294901760, %s1123_s27 }
  0x27   : > { %v1283_v62 = vor.u32 %v1281_v45, %v1280_v53  ;;  %v1361_v63 = vor.u32 %v1360_v54, %v1278_v44  ;;  %v1290_v31 = vor.u32 %v1288_v52, %v1287_v1  ;;  %v1363_v35 = vor.u32 %v1362_v5, %v1285_v51  ;;  %s3897_s11 = sadd.s32 %s3276_s28, %s3734_s20  ;;  %s4876_s21 = smov (%p1119_p11, %s1124_s21), 2143289344 }
  0x28   : > { %v1347_v2 = vsel %vm3830_vm4, 0, %v1276_v58  ;;  %v3857_v3 = vsel %vm3838_vm5, %v1359_v59, 0  ;;  %s3278_s24 = sshll.u32 %s3897_s11, 2  ;;  %v1714_v50 = vmul.bf16 %v3826_v47, %v3805_v33  ;;  %v3322_v52 = vcombine.low %v1430_v36, %v1431_v40  ;;  %v1179_v58 = vld [vmem:[%s3863_s19 + $0x8] sm:$0xf]  ;;  %p987_p12 = scmp.lt.s32.totalorder %s3846_s10, 15 }
  0x29   : > { %v3868_v6 = vsel %vm3830_vm4, 0, %v1283_v62  ;;  %v3872_v7 = vsel %vm3838_vm5, %v1361_v63, 0  ;;  %v1410_v8 = vmul.bf16 %v3765_v17, %v1347_v2  ;;  %v1505_v9 = vmul.bf16 %v3768_v19, %v3857_v3  ;;  %v1180_v63 = vld [vmem:[%s3863_s19 + $0xc] sm:$0xf]  ;;  %s1127_s23 = sshrl.u32 %s4876_s21, 16  ;;  %s1042_s0 = scalar_lea.vmem %s4794_s4, %s3278_s24 }
  0x2a   : > { %v1543_v14 = vmul.bf16 %v3771_v20, %v1347_v2  ;;  %v1544_v15 = vmul.bf16 %v3771_v20, %v3868_v6  ;;  %v1638_v16 = vmul.bf16 %v3785_v25, %v3857_v3  ;;  %v1639_v18 = vmul.bf16 %v3785_v25, %v3872_v7  ;;  %s955_s27 = scalar_lea.vmem %s4832_s1, %s3278_s24  ;;  %s1143_s28 = sshll.u32 %s1127_s23, 16  ;;  %v1174_v21 = vld [vmem:[%s1042_s0 + $0x4] sm:$0xf] }
  0x2b   : > { %v1693_v24 = vmul.bf16 %v3788_v26, %v3868_v6  ;;  %v1788_v27 = vmul.bf16 %v3802_v32, %v3872_v7  ;;  %v3911_v45 = vsel %vm3830_vm4, 0, %v1290_v31  ;;  %v3915_v48 = vsel %vm3838_vm5, %v1363_v35, 0  ;;  %s1144_s1 = sor.u32 %s1143_s28, %s1127_s23  ;;  %s4878_s10 = smov (!%p987_p12, %s3846_s10), 15 }
  0x2c   : > { %v1626_v30 = vadd.bf16 %v3330_v0, %v1543_v14  ;;  %v3331_v53 = vcombine.low %v1564_v41, %v1565_v43  ;;  %v1694_v54 = vmul.bf16 %v3788_v26, %v3911_v45  ;;  %v1715_v61 = vmul.bf16 %v3826_v47, %v3817_v38  ;;  %p1108_p13 = scmp.lt.s32.totalorder %s3593_s29, 1 }
  0x2d   : > { %v1776_v37 = vadd.bf16 %v3339_v4, %v1693_v24  ;;  %v1789_v62 = vmul.bf16 %v3802_v32, %v3915_v48  ;;  %v1493_v2 = vadd.bf16 %v3322_v52, %v1410_v8  ;;  %v3945_v5 = vmul.bf16 %v1177_v56, %v3779_v22  ;;  %v1141_v24 = vld [vmem:[%s955_s27] sm:$0xf] }
  0x2e   : > { %v3907_v44 = vadd.bf16 %v1638_v16, %v1626_v30  ;;  %v1627_v3 = vadd.bf16 %v3331_v53, %v1544_v15  ;;  %v3340_v4 = vcombine.low %v1714_v50, %v1715_v61  ;;  %v3948_v14 = vmul.bf16 %v1178_v57, %v3782_v23  ;;  %v1173_v53 = vld [vmem:[%s1042_s0] sm:$0xf]  ;;  %s1129_s21 = scalar_select %p1108_p13, 1, 0 }
  0x2f   : > { %v3924_v51 = vadd.bf16 %v1788_v27, %v1776_v37  ;;  %v3951_v16 = vmul.bf16 %v1179_v58, %v3793_v28  ;;  %v1142_v27 = vld [vmem:[%s955_s27 + $0x4] sm:$0xf]  ;;  %v1513_v30 = vadd.bf16 %v1505_v9, %v1493_v2  ;;  %v3959_v22 = vmul.bf16 %v1180_v63, %v3796_v29  ;;  %s4882_s29 = smov (!%p1108_p13, %s3593_s29), 1 }
  0x30   : > { %v1654_v59 = vunpack.c.l.bf16 %v3907_v44  ;;  %v1655_v60 = vunpack.c.h.bf16 %v3907_v44  ;;  %v1647_v31 = vadd.bf16 %v1639_v18, %v1627_v3  ;;  %v3963_v23 = vrot.slane %v3809_v34, %v3751_v10  ;;  %v1181_v44 = vld [vmem:[%s3863_s19 + $0x10] sm:$0xf] }
  0x31   : > { %v1804_v0 = vunpack.c.l.bf16 %v3924_v51  ;;  %v1805_v1 = vunpack.c.h.bf16 %v3924_v51  ;;  %v1777_v8 = vadd.bf16 %v3340_v4, %v1694_v54  ;;  %v3967_v15 = vcombine.low %v3945_v5, %v3948_v14 }
  0x32   : > { %4833 = vst [vmem:[#allocation4_spill] sm:$0xff] %v3963_v23  ;;  %v3972_v9 = vpack.i.b16 %v2081_v39, %v2081_v39  ;;  %v3976_v18 = vrot.slane %v3809_v34, %v3753_v12  ;;  %v1145_v35 = vstv %s1144_s1  ;;  %v1522_v36 = vunpack.c.l.bf16 %v1513_v30  ;;  %s3283_s1 = sshll.u32 %s4878_s10, 1 }
  0x33   : > { %v1523_v37 = vunpack.c.h.bf16 %v1513_v30  ;;  %v1656_v40 = vunpack.c.l.bf16 %v1647_v31  ;;  %v1147_v41 = vmul.bf16 %v1145_v35, %v1141_v24  ;;  %v1148_v43 = vmul.bf16 %v1145_v35, %v1142_v27  ;;  %s3988_s11 = sadd.s32 %s3283_s1, %s3734_s20  ;;  %s4434_s1 = scvt.s32.f32 %s1129_s21 }
  0x34   : > { %v1657_v50 = vunpack.c.h.bf16 %v1647_v31  ;;  %v1797_v52 = vadd.bf16 %v1789_v62, %v1777_v8  ;;  %v3350_v39 = vcombine.low %v3951_v16, %v3959_v22  ;;  %v1941_v34 = vshrl.u32 %v3967_v15, 16  ;;  %v3997_v31 = vld [vmem:[%s4798_s8] ss:$0 sm:$0xff]  ;;  %s3285_s23 = sshll.u32 %s3988_s11, 2 }
  0x35   : > { %v1672_v54 = vadd.f32 %v1656_v40, %v1522_v36  ;;  %v1944_v56 = vshll.u32 %v3967_v15, 16  ;;  %v3310_v57 = vcombine.low %v1147_v41, %v1148_v43  ;;  %v1428_v58 = vmul.bf16 %v3820_v42, %v1147_v41  ;;  %s1133_s0 = sshrl.u32 %s4434_s1, 16  ;;  %p1132_p0 = scmp.ne.f32.partialorder %s4434_s1, %s4434_s1 }
  0x36   : > { %v1429_v61 = vmul.bf16 %v3820_v42, %v1148_v43  ;;  %v1673_v63 = vadd.f32 %v1657_v50, %v1523_v37  ;;  %v1806_v62 = vunpack.c.l.bf16 %v1797_v52  ;;  %v1807_v2 = vunpack.c.h.bf16 %v1797_v52  ;;  %s1134_s24 = sand.u32 1, %s1133_s0 }
  0x37   : > { %v3990_v3 = vmul.bf16 %v1173_v53, %v1147_v41  ;;  %v3992_v4 = vmul.bf16 %v1174_v21, %v1148_v43  ;;  %v1264_v24 = vshrl.u32 %v3310_v57, 16  ;;  %v1267_v27 = vshll.u32 %v3310_v57, 16  ;;  %s1135_s20 = sadd.s32 32767, %s1134_s24 }
  0x38   : > { %v3321_v30 = vcombine.low %v1428_v58, %v1429_v61  ;;  %v1943_v8 = vrot.slane %v1941_v34, 7  ;;  %v1822_v15 = vadd.f32 %v1806_v62, %v1672_v54  ;;  %v1823_v35 = vadd.f32 %v1807_v2, %v1673_v63  ;;  %s4483_s10 = sadd.s32 %s1135_s20, %s4434_s1  ;;  %s993_s1 = scalar_lea.vmem %s4792_s2, %s3285_s23 }
  0x39   : > { %v3348_v36 = vcombine.low %v3990_v3, %v3992_v4  ;;  %v1948_v37 = vshrl.u32 %v3350_v39, 16  ;;  %v1266_v40 = vrot.slane %v1264_v24, 7  ;;  %v1356_v41 = vrot.slane %v1267_v27, 1  ;;  %s1137_s27 = sand.u32 4294901760, %s4483_s10 }
  0x3a   : > { %v1946_v50 = vor.u32 %v1944_v56, %v1943_v8  ;;  %v1951_v43 = vshll.u32 %v3350_v39, 16  ;;  %v1845_v52 = vadd.f32 %v3997_v31, %v1822_v15  ;;  %v1846_v53 = vadd.f32 %v3997_v31, %v1823_v35  ;;  %s4880_s27 = smov (%p1132_p0, %s1137_s27), 2143289344 }
  0x3b   : > { %v1934_v21 = vshrl.u32 %v3348_v36, 16  ;;  %v1937_v57 = vshll.u32 %v3348_v36, 16  ;;  %v1269_v58 = vor.u32 %v1267_v27, %v1266_v40  ;;  %v1357_v61 = vor.u32 %v1356_v41, %v1264_v24 }
  0x3c   : > { %v1950_v13 = vrot.slane %v1948_v37, 7  ;;  %v4005_v54 = vsel %vm3830_vm4, 0, %v1946_v50  ;;  %v1861_v63 = vmax.f32 %v1845_v52, 0.0  ;;  %v1862_v62 = vmax.f32 %v1846_v53, 0.0 }
  0x3d   : > { %v1936_v2 = vrot.slane %v1934_v21, 7  ;;  %v2023_v11 = vrot.slane %v1937_v57, 1  ;;  %v1346_v39 = vsel %vm3830_vm4, 0, %v1269_v58  ;;  %v1389_v8 = vsel %vm3838_vm5, %v1357_v61, 0 }
  0x3e   : > { %v1953_v15 = vor.u32 %v1951_v43, %v1950_v13  ;;  %v2025_v35 = vrot.slane %v1944_v56, 1  ;;  %v1409_v27 = vmul.bf16 %v3765_v17, %v1346_v39  ;;  %v1504_v24 = vmul.bf16 %v3768_v19, %v1389_v8  ;;  %v2064_v13 = vld [vmem:[%s4797_s7 + $0x2] sm:$0x3] }
  0x3f   : > { %v4013_v36 = vpack.c.bf16 %v1862_v62, %v1861_v63  ;;  %v1939_v40 = vor.u32 %v1937_v57, %v1936_v2  ;;  %v2024_v50 = vor.u32 %v2023_v11, %v1934_v21  ;;  %v2027_v53 = vrot.slane %v1951_v43, 1  ;;  %v2065_v21 = vld [vmem:[%s4797_s7 + $0x4] sm:$0x3]  ;;  %v1182_v57 = vld [vmem:[%s3863_s19 + $0x14] sm:$0xf] }
  0x40   : > { %v4017_v41 = vsel %vm3830_vm4, 0, %v1953_v15  ;;  %v2026_v52 = vor.u32 %v2025_v35, %v1941_v34  ;;  %v1492_v58 = vadd.bf16 %v3321_v30, %v1409_v27  ;;  %v2087_v62 = vrot.slane %v3972_v9, %v3751_v10 }
  0x41   : > { %4834 = vst [vmem:[#allocation5_spill] sm:$0xff] %v4017_v41  ;;  %v2013_v61 = vsel %vm3830_vm4, 0, %v1939_v40  ;;  %v2028_v63 = vor.u32 %v2027_v53, %v1948_v37  ;;  %v2053_v11 = vsel %vm3838_vm5, %v2024_v50, 0  ;;  %v2201_v8 = vpack.i.b16 %v2064_v13, %v2064_v13 }
  0x42   : > { %v4032_v34 = vsel %vm3838_vm5, %v2026_v52, 0  ;;  %v2073_v30 = vmul.bf16 %v3963_v23, %v2013_v61  ;;  %v1512_v43 = vadd.bf16 %v1504_v24, %v1492_v58  ;;  %v2168_v2 = vmul.bf16 %v3976_v18, %v2053_v11 }
  0x43   : > { %v4045_v39 = vsel %vm3838_vm5, %v2028_v63, 0  ;;  %v2215_v15 = vshrl.u32 %v2064_v13, 16  ;;  %v2351_v35 = vpack.i.b16 %v2065_v21, %v2065_v21  ;;  %v4047_v40 = vcombine.low %v2087_v62, %v2087_v62 }
  0x44   : > { %4835 = vst [vmem:[#allocation6_spill] sm:$0xff] %v4045_v39  ;;  %v1520_v27 = vunpack.c.l.bf16 %v1512_v43  ;;  %v1521_v24 = vunpack.c.h.bf16 %v1512_v43  ;;  %v4052_v50 = vrot.slane %v2201_v8, %v3751_v10  ;;  %v4055_v53 = vrot.slane %v2201_v8, %v3753_v12 }
  0x45   : > { %v2216_v52 = vpack.i.b16 %v2215_v15, %v2215_v15  ;;  %v4058_v58 = vrot.slane %v2351_v35, %v3751_v10  ;;  %v2092_v63 = vmul.bf16 %v4047_v40, %v3990_v3  ;;  %v2093_v11 = vmul.bf16 %v4047_v40, %v3992_v4 }
  0x46   : > { %4836 = vst [vmem:[#allocation7_spill] sm:$0xff] %v4055_v53  ;;  %v1670_v61 = vadd.f32 %v1654_v59, %v1520_v27  ;;  %v1671_v13 = vadd.f32 %v1655_v60, %v1521_v24  ;;  %v2207_v43 = vmul.bf16 %v4052_v50, %v4005_v54  ;;  %v2208_v62 = vmul.bf16 %v4052_v50, %v4017_v41 }
  0x47   : > { %v2221_v8 = vrot.slane %v2216_v52, %v3751_v10  ;;  %v2302_v59 = vmul.bf16 %v4055_v53, %v4032_v34  ;;  %v3359_v15 = vcombine.low %v2092_v63, %v2093_v11  ;;  %v2303_v4 = vmul.bf16 %v4055_v53, %v4045_v39 }
  0x48   : > { %v1820_v60 = vadd.f32 %v1804_v0, %v1670_v61  ;;  %v1821_v3 = vadd.f32 %v1805_v1, %v1671_v13  ;;  %v2357_v24 = vmul.bf16 %v4058_v58, %v4017_v41  ;;  %v2365_v52 = vshrl.u32 %v2065_v21, 16 }
  0x49   : > { %v4082_v27 = vcombine.low %v2221_v8, %v2221_v8  ;;  %v4087_v9 = vrot.slane %v2351_v35, %v3753_v12  ;;  %v2156_v0 = vadd.bf16 %v3359_v15, %v2073_v30  ;;  %v4093_v1 = vmul.bf16 %v1181_v44, %v3805_v33  ;;  %v4110_v15 = vld [vmem:[%s3762_s25 + $0x18] sm:$0xf] }
  0x4a   : > { %v1843_v37 = vadd.f32 %v3997_v31, %v1820_v60  ;;  %v1844_v51 = vadd.f32 %v3997_v31, %v1821_v3  ;;  %v2366_v13 = vpack.i.b16 %v2365_v52, %v2365_v52  ;;  %v4102_v8 = vmul.bf16 %v1182_v57, %v3817_v38  ;;  %v4113_v52 = vld [vmem:[%s3762_s25 + $0x1c] sm:$0xf] }
  0x4b   : > { %4837 = vst [vmem:[#allocation8_spill] sm:$0xff] %v4082_v27  ;;  %v2226_v61 = vmul.bf16 %v4082_v27, %v3945_v5  ;;  %v2227_v21 = vmul.bf16 %v4082_v27, %v3948_v14  ;;  %v2452_v12 = vmul.bf16 %v4087_v9, %v4045_v39  ;;  %v2176_v11 = vadd.bf16 %v2168_v2, %v2156_v0 }
  0x4c   : > { %v1859_v35 = vmax.f32 %v1843_v37, 0.0  ;;  %v1860_v63 = vmax.f32 %v1844_v51, 0.0  ;;  %v2371_v44 = vrot.slane %v2366_v13, %v3751_v10  ;;  %v2094_v60 = vmul.bf16 %v4047_v40, %v3945_v5 }
  0x4d   : > { %v3368_v30 = vcombine.low %v2226_v61, %v2227_v21  ;;  %v2095_v3 = vmul.bf16 %v4047_v40, %v3948_v14  ;;  %v2184_v37 = vunpack.c.l.bf16 %v2176_v11  ;;  %v2185_v51 = vunpack.c.h.bf16 %v2176_v11 }
  0x4e   : > { %v1875_v56 = vpack.c.bf16 %v1860_v63, %v1859_v35  ;;  %v3351_v57 = vcombine.low %v4093_v1, %v4102_v8  ;;  %v4117_v0 = vcombine.low %v2371_v44, %v2371_v44  ;;  %v2228_v5 = vmul.bf16 %v4082_v27, %v3951_v16 }
  0x4f   : > { %v2290_v2 = vadd.bf16 %v3368_v30, %v2207_v43  ;;  %v3360_v10 = vcombine.low %v2094_v60, %v2095_v3  ;;  %v2229_v21 = vmul.bf16 %v4082_v27, %v3959_v22  ;;  %v3314_v13 = vcombine.low %v4110_v15, %v4113_v52 }
  0x50   : > { %3485 = vmatprep.mubr.msk.bf16.mxu0 %vm2567_vm6, %v1875_v56  ;;  %v1955_v14 = vshrl.u32 %v3351_v57, 16  ;;  %v1958_v61 = vshll.u32 %v3351_v57, 16  ;;  %v2376_v35 = vmul.bf16 %v4117_v0, %v3951_v16  ;;  %v2377_v63 = vmul.bf16 %v4117_v0, %v3959_v22 }
  0x51   : > { %3486 = vmatmul.mubr.msk.bf16.vlgmr.msra.gmra.mrb[0].mxu0 %vm2567_vm6, %v4013_v36  ;;  %v2310_v43 = vadd.bf16 %v2302_v59, %v2290_v2  ;;  %v4838_v56 = vmul.bf16 %v3963_v23, %v4005_v54  ;;  %v3369_v60 = vcombine.low %v2228_v5, %v2229_v21  ;;  %v2378_v3 = vmul.bf16 %v4117_v0, %v4093_v1 }
  0x52   : > { %v1957_v30 = vrot.slane %v1955_v14, 7  ;;  %v2029_v44 = vrot.slane %v1958_v61, 1  ;;  %v3377_v36 = vcombine.low %v2376_v35, %v2377_v63  ;;  %v4839_v59 = vmul.bf16 %v3976_v18, %v4032_v34 }
  0x53   : > { %v2157_v11 = vadd.bf16 %v3360_v10, %v4838_v56  ;;  %v2318_v57 = vunpack.c.l.bf16 %v2310_v43  ;;  %v2319_v39 = vunpack.c.h.bf16 %v2310_v43  ;;  %v2291_v27 = vadd.bf16 %v3369_v60, %v2208_v62 }
  0x54   : > { %v1960_v53 = vor.u32 %v1958_v61, %v1957_v30  ;;  %v2030_v41 = vor.u32 %v2029_v44, %v1955_v14  ;;  %v2379_v54 = vmul.bf16 %v4117_v0, %v4102_v8  ;;  %v2440_v23 = vadd.bf16 %v3377_v36, %v2357_v24 }
  0x55   : > { %v2177_v2 = vadd.bf16 %v4839_v59, %v2157_v11  ;;  %v2334_v10 = vadd.f32 %v2318_v57, %v2184_v37  ;;  %v2335_v56 = vadd.f32 %v2319_v39, %v2185_v51  ;;  %v2311_v35 = vadd.bf16 %v2303_v4, %v2291_v27 }
  0x56   : > { %v4144_v21 = vsel %vm3830_vm4, 0, %v1960_v53  ;;  %v4148_v43 = vsel %vm3838_vm5, %v2030_v41, 0  ;;  %v2460_v61 = vadd.bf16 %v2452_v12, %v2440_v23  ;;  %v3378_v14 = vcombine.low %v2378_v3, %v2379_v54  ;;  %v4159_v23 = vld [vmem:[%s4799_s9] ss:$0 sm:$0xff] }
  0x57   : > { %v2186_v5 = vunpack.c.l.bf16 %v2177_v2  ;;  %v2187_v34 = vunpack.c.h.bf16 %v2177_v2  ;;  %v2358_v62 = vmul.bf16 %v4058_v58, %v4144_v21  ;;  %v2453_v39 = vmul.bf16 %v4087_v9, %v4148_v43 }
  0x58   : > { %v2320_v24 = vunpack.c.l.bf16 %v2311_v35  ;;  %v2321_v37 = vunpack.c.h.bf16 %v2311_v35  ;;  %v1292_v51 = vshrl.u32 %v3314_v13, 16  ;;  %v1295_v63 = vshll.u32 %v3314_v13, 16 }
  0x59   : > { %v2468_v53 = vunpack.c.l.bf16 %v2460_v61  ;;  %v2469_v11 = vunpack.c.h.bf16 %v2460_v61  ;;  %v2441_v30 = vadd.bf16 %v3378_v14, %v2358_v62  ;;  %v1432_v41 = vmul.bf16 %v3820_v42, %v3793_v28 }
  0x5a   : > { %v2336_v4 = vadd.f32 %v2320_v24, %v2186_v5  ;;  %v2337_v27 = vadd.f32 %v2321_v37, %v2187_v34  ;;  %v1294_v12 = vrot.slane %v1292_v51, 7  ;;  %v1364_v44 = vrot.slane %v1295_v63, 1 }
  0x5b   : > { %v2484_v60 = vadd.f32 %v2468_v53, %v2334_v10  ;;  %v2485_v3 = vadd.f32 %v2469_v11, %v2335_v56  ;;  %v2461_v57 = vadd.bf16 %v2453_v39, %v2441_v30  ;;  %v1433_v13 = vmul.bf16 %v3820_v42, %v3796_v29  ;;  %v4187_v30 = vld [vmem:[%s3762_s25 + $0x20] sm:$0xf] }
  0x5c   : > { %v1297_v36 = vor.u32 %v1295_v63, %v1294_v12  ;;  %v1365_v59 = vor.u32 %v1364_v44, %v1292_v51  ;;  %v1545_v28 = vmul.bf16 %v3771_v20, %v3911_v45  ;;  %v1566_v2 = vmul.bf16 %v3824_v46, %v3805_v33 }
  0x5d   : > { %v2507_v54 = vadd.f32 %v4159_v23, %v2484_v60  ;;  %v2508_v5 = vadd.f32 %v4159_v23, %v2485_v3  ;;  %v2470_v10 = vunpack.c.l.bf16 %v2461_v57  ;;  %v2471_v56 = vunpack.c.h.bf16 %v2461_v57 }
  0x5e   : > { %v4171_v34 = vsel %vm3830_vm4, 0, %v1297_v36  ;;  %v4175_v29 = vsel %vm3838_vm5, %v1365_v59, 0  ;;  %v3323_v35 = vcombine.low %v1432_v41, %v1433_v13  ;;  %v1567_v61 = vmul.bf16 %v3824_v46, %v3817_v38  ;;  %v4190_v41 = vld [vmem:[%s3762_s25 + $0x24] sm:$0xf] }
  0x5f   : > { %v2523_v62 = vmax.f32 %v2507_v54, 0.0  ;;  %v2524_v14 = vmax.f32 %v2508_v5, 0.0  ;;  %v2486_v39 = vadd.f32 %v2470_v10, %v2336_v4  ;;  %v2487_v24 = vadd.f32 %v2471_v56, %v2337_v27 }
  0x60   : > { %v4840_v37 = vmul.bf16 %v3765_v17, %v3868_v6  ;;  %v3332_v63 = vcombine.low %v1566_v2, %v1567_v61  ;;  %v1640_v53 = vmul.bf16 %v3785_v25, %v3915_v48  ;;  %v1695_v11 = vmul.bf16 %v3788_v26, %v4171_v34 }
  0x61   : > { %v2539_v12 = vpack.c.bf16 %v2524_v14, %v2523_v62  ;;  %v2509_v44 = vadd.f32 %v4159_v23, %v2486_v39  ;;  %v2510_v4 = vadd.f32 %v4159_v23, %v2487_v24  ;;  %v1716_v6 = vmul.bf16 %v3826_v47, %v4110_v15 }
  0x62   : > { %v1494_v51 = vadd.bf16 %v3323_v35, %v4840_v37  ;;  %v4841_v27 = vmul.bf16 %v3768_v19, %v3872_v7  ;;  %v1628_v3 = vadd.bf16 %v3332_v63, %v1545_v28  ;;  %v1717_v57 = vmul.bf16 %v3826_v47, %v4113_v52 }
  0x63   : > { %v1790_v13 = vmul.bf16 %v3802_v32, %v4175_v29  ;;  %3465 = vmatprep.mubr.msk.bf16.mxu1 %vm2567_vm6, %v2539_v12  ;;  %v2525_v36 = vmax.f32 %v2509_v44, 0.0  ;;  %v2526_v59 = vmax.f32 %v2510_v4, 0.0  ;;  %v3315_v2 = vcombine.low %v4187_v30, %v4190_v41 }
  0x64   : > { %v1514_v60 = vadd.bf16 %v4841_v27, %v1494_v51  ;;  %v1412_v54 = vmul.bf16 %v3765_v17, %v3911_v45  ;;  %v1648_v10 = vadd.bf16 %v1640_v53, %v1628_v3  ;;  %v3341_v28 = vcombine.low %v1716_v6, %v1717_v57 }
  0x65   : > { %v2540_v56 = vpack.c.bf16 %v2526_v59, %v2525_v36  ;;  %v1299_v35 = vshrl.u32 %v3315_v2, 16  ;;  %v1302_v61 = vshll.u32 %v3315_v2, 16  ;;  %v1434_v62 = vmul.bf16 %v3820_v42, %v3805_v33  ;;  %v1183_v36 = vld [vmem:[%s3863_s19 + $0x18] sm:$0xf] }
  0x66   : > { %v1524_v5 = vunpack.c.l.bf16 %v1514_v60  ;;  %v1525_v7 = vunpack.c.h.bf16 %v1514_v60  ;;  %v1658_v14 = vunpack.c.l.bf16 %v1648_v10  ;;  %v1659_v39 = vunpack.c.h.bf16 %v1648_v10 }
  0x67   : > { %v1778_v24 = vadd.bf16 %v3341_v28, %v1695_v11  ;;  %v1435_v37 = vmul.bf16 %v3820_v42, %v3817_v38  ;;  %3466 = vmatmul.mubr.msk.bf16.vlgmr.msra.gmra.mrb[0].mxu1 %vm2567_vm6, %v2540_v56  ;;  %v1301_v51 = vrot.slane %v1299_v35, 7  ;;  %v1366_v45 = vrot.slane %v1302_v61, 1  ;;  %v1184_v56 = vld [vmem:[%s3863_s19 + $0x1c] sm:$0xf] }
  0x68   : > { %v1507_v63 = vmul.bf16 %v3768_v19, %v3915_v48  ;;  %v1546_v53 = vmul.bf16 %v3771_v20, %v4171_v34  ;;  %v1674_v12 = vadd.f32 %v1658_v14, %v1524_v5  ;;  %v1675_v44 = vadd.f32 %v1659_v39, %v1525_v7 }
  0x69   : > { %v1798_v33 = vadd.bf16 %v1790_v13, %v1778_v24  ;;  %v3324_v4 = vcombine.low %v1434_v62, %v1435_v37  ;;  %v1304_v6 = vor.u32 %v1302_v61, %v1301_v51  ;;  %v1367_v11 = vor.u32 %v1366_v45, %v1299_v35 }
  0x6a   : > { %v1568_v38 = vmul.bf16 %v3824_v46, %v4110_v15  ;;  %v1569_v27 = vmul.bf16 %v3824_v46, %v4113_v52  ;;  %v1641_v48 = vmul.bf16 %v3785_v25, %v4175_v29  ;;  %v1718_v5 = vmul.bf16 %v3826_v47, %v4187_v30 }
  0x6b   : > { %v1808_v60 = vunpack.c.l.bf16 %v1798_v33  ;;  %v1809_v3 = vunpack.c.h.bf16 %v1798_v33  ;;  %v1495_v57 = vadd.bf16 %v3324_v4, %v1412_v54  ;;  %v4226_v13 = vsel %vm3830_vm4, 0, %v1304_v6 }
  0x6c   : > { %v4230_v59 = vsel %vm3838_vm5, %v1367_v11, 0  ;;  %v3333_v2 = vcombine.low %v1568_v38, %v1569_v27  ;;  %v1696_v54 = vmul.bf16 %v3788_v26, %v4226_v13  ;;  %v1719_v61 = vmul.bf16 %v3826_v47, %v4190_v41 }
  0x6d   : > { %v1824_v7 = vadd.f32 %v1808_v60, %v1674_v12  ;;  %v1825_v10 = vadd.f32 %v1809_v3, %v1675_v44  ;;  %v1515_v28 = vadd.bf16 %v1507_v63, %v1495_v57  ;;  %v1791_v62 = vmul.bf16 %v3802_v32, %v4230_v59 }
  0x6e   : > { %v1629_v35 = vadd.bf16 %v3333_v2, %v1546_v53  ;;  %v4242_v14 = vmul.bf16 %v1183_v36, %v4110_v15  ;;  %v3342_v63 = vcombine.low %v1718_v5, %v1719_v61  ;;  %v4247_v12 = vmul.bf16 %v1184_v56, %v4113_v52 }
  0x6f   : > { %v1847_v39 = vadd.f32 %v3997_v31, %v1824_v7  ;;  %v1848_v24 = vadd.f32 %v3997_v31, %v1825_v10  ;;  %v1526_v37 = vunpack.c.l.bf16 %v1515_v28  ;;  %v1527_v51 = vunpack.c.h.bf16 %v1515_v28  ;;  %v4843_v28 = vld [vmem:[#allocation4_spill] sm:$0xff] }
  0x70   : > { %v1649_v45 = vadd.bf16 %v1641_v48, %v1629_v35  ;;  %v2096_v53 = vmul.bf16 %v4047_v40, %v3951_v16  ;;  %v2097_v4 = vmul.bf16 %v4047_v40, %v3959_v22  ;;  %v2209_v6 = vmul.bf16 %v4052_v50, %v4144_v21  ;;  %v4842_v48 = vld [vmem:[#allocation8_spill] sm:$0xff] }
  0x71   : > { %v1863_v44 = vmax.f32 %v1847_v39, 0.0  ;;  %v1864_v33 = vmax.f32 %v1848_v24, 0.0  ;;  %v1779_v27 = vadd.bf16 %v3342_v63, %v1696_v54  ;;  %v3352_v60 = vcombine.low %v4242_v14, %v4247_v12  ;;  %v4844_v54 = vld [vmem:[#allocation5_spill] sm:$0xff]  ;;  %v4846_v39 = vld [vmem:[#allocation7_spill] sm:$0xff] }
  0x72   : > { %v1660_v11 = vunpack.c.l.bf16 %v1649_v45  ;;  %v1661_v38 = vunpack.c.h.bf16 %v1649_v45  ;;  %v3361_v57 = vcombine.low %v2096_v53, %v2097_v4  ;;  %v2230_v16 = vmul.bf16 %v4842_v48, %v4093_v1  ;;  %v1185_v45 = vld [vmem:[%s3863_s19 + $0x20] sm:$0xf] }
  0x73   : > { %v1877_v3 = vpack.c.bf16 %v1864_v33, %v1863_v44  ;;  %v2231_v36 = vmul.bf16 %v4842_v48, %v4102_v8  ;;  %v1799_v5 = vadd.bf16 %v1791_v62, %v1779_v27  ;;  %v1962_v7 = vshrl.u32 %v3352_v60, 16 }
  0x74   : > { %v1676_v2 = vadd.f32 %v1660_v11, %v1526_v37  ;;  %v1677_v22 = vadd.f32 %v1661_v38, %v1527_v51  ;;  %v1965_v10 = vshll.u32 %v3352_v60, 16  ;;  %v4845_v56 = vmul.bf16 %v4843_v28, %v4844_v54  ;;  %v4847_v51 = vld [vmem:[#allocation6_spill] sm:$0xff] }
  0x75   : > { %3489 = vmatprep.mubr.msk.bf16.mxu0 %vm2567_vm6, %v1877_v3  ;;  %v3370_v61 = vcombine.low %v2230_v16, %v2231_v36  ;;  %v2304_v24 = vmul.bf16 %v4846_v39, %v4148_v43  ;;  %v1810_v63 = vunpack.c.l.bf16 %v1799_v5  ;;  %v1811_v53 = vunpack.c.h.bf16 %v1799_v5 }
  0x76   : > { %v2158_v35 = vadd.bf16 %v3361_v57, %v4845_v56  ;;  %v1964_v44 = vrot.slane %v1962_v7, 7  ;;  %v2380_v62 = vmul.bf16 %v4117_v0, %v4242_v14  ;;  %v2031_v37 = vrot.slane %v1965_v10, 1  ;;  %v1186_v56 = vld [vmem:[%s3863_s19 + $0x24] sm:$0xf] }
  0x77   : > { %v4848_v33 = vmul.bf16 %v3976_v18, %v4847_v51  ;;  %v2292_v11 = vadd.bf16 %v3370_v61, %v2209_v6  ;;  %v2381_v38 = vmul.bf16 %v4117_v0, %v4247_v12  ;;  %v1826_v27 = vadd.f32 %v1810_v63, %v1676_v2 }
  0x78   : > { %v1827_v60 = vadd.f32 %v1811_v53, %v1677_v22  ;;  %v1967_v3 = vor.u32 %v1965_v10, %v1964_v44  ;;  %v4276_v57 = vmul.bf16 %v1185_v45, %v4187_v30  ;;  %v2032_v16 = vor.u32 %v2031_v37, %v1962_v7 }
  0x79   : > { %v2178_v4 = vadd.bf16 %v4848_v33, %v2158_v35  ;;  %v2312_v54 = vadd.bf16 %v2304_v24, %v2292_v11  ;;  %v1849_v32 = vadd.f32 %v3997_v31, %v1826_v27  ;;  %v3379_v35 = vcombine.low %v2380_v62, %v2381_v38 }
  0x7a   : > { %4849 = vst [vmem:[#allocation4_spill] sm:$0xff] %v4276_v57  ;;  %v1850_v51 = vadd.f32 %v3997_v31, %v1827_v60  ;;  %v4283_v6 = vsel %vm3830_vm4, 0, %v1967_v3  ;;  %v4287_v2 = vsel %vm3838_vm5, %v2032_v16, 0  ;;  %v4294_v63 = vmul.bf16 %v1186_v56, %v4190_v41 }
  0x7b   : > { %v2188_v36 = vunpack.c.l.bf16 %v2178_v4  ;;  %v2189_v5 = vunpack.c.h.bf16 %v2178_v4  ;;  %v2322_v22 = vunpack.c.l.bf16 %v2312_v54  ;;  %v2323_v10 = vunpack.c.h.bf16 %v2312_v54 }
  0x7c   : > { %v2359_v7 = vmul.bf16 %v4058_v58, %v4283_v6  ;;  %v1865_v61 = vmax.f32 %v1849_v32, 0.0  ;;  %v1866_v24 = vmax.f32 %v1850_v51, 0.0  ;;  %v2454_v45 = vmul.bf16 %v4087_v9, %v4287_v2 }
  0x7d   : > { %v2338_v53 = vadd.f32 %v2322_v22, %v2188_v36  ;;  %v2339_v44 = vadd.f32 %v2323_v10, %v2189_v5  ;;  %v2076_v37 = vmul.bf16 %v4843_v28, %v4144_v21  ;;  %v3353_v4 = vcombine.low %v4276_v57, %v4294_v63  ;;  %v4314_v5 = vld [vmem:[%s3762_s25 + $0x28] sm:$0xf] }
  0x7e   : > { %v2442_v62 = vadd.bf16 %v3379_v35, %v2359_v7  ;;  %v1878_v33 = vpack.c.bf16 %v1866_v24, %v1865_v61  ;;  %v2098_v32 = vmul.bf16 %v4047_v40, %v4093_v1  ;;  %v2099_v11 = vmul.bf16 %v4047_v40, %v4102_v8  ;;  %v4317_v8 = vld [vmem:[%s3762_s25 + $0x2c] sm:$0xf] }
  0x7f   : > { %v2171_v27 = vmul.bf16 %v3976_v18, %v4148_v43  ;;  %v2210_v60 = vmul.bf16 %v4052_v50, %v4283_v6  ;;  %v2232_v21 = vmul.bf16 %v4842_v48, %v4242_v14  ;;  %v1969_v3 = vshrl.u32 %v3353_v4, 16 }
  0x80   : > { %v2462_v38 = vadd.bf16 %v2454_v45, %v2442_v62  ;;  %3490 = vmatmul.mubr.msk.bf16.gmra.mrb[4].mxu0 %vm2567_vm6, %v1878_v33  ;;  %v1972_v16 = vshll.u32 %v3353_v4, 16  ;;  %v3362_v36 = vcombine.low %v2098_v32, %v2099_v11  ;;  %v2233_v1 = vmul.bf16 %v4842_v48, %v4247_v12 }
  0x81   : > { %v2305_v56 = vmul.bf16 %v4846_v39, %v4287_v2  ;;  %v2382_v51 = vmul.bf16 %v4117_v0, %v4276_v57  ;;  %v1971_v35 = vrot.slane %v1969_v3, 7  ;;  %v2383_v45 = vmul.bf16 %v4117_v0, %v4294_v63 }
  0x82   : > { %v2472_v54 = vunpack.c.l.bf16 %v2462_v38  ;;  %v2473_v43 = vunpack.c.h.bf16 %v2462_v38  ;;  %v2033_v22 = vrot.slane %v1972_v16, 1  ;;  %v2159_v10 = vadd.bf16 %v3362_v36, %v2076_v37 }
  0x83   : > { %v3371_v7 = vcombine.low %v2232_v21, %v2233_v1  ;;  %v3316_v62 = vcombine.low %v4314_v5, %v4317_v8  ;;  %v1974_v33 = vor.u32 %v1972_v16, %v1971_v35  ;;  %v3380_v48 = vcombine.low %v2382_v51, %v2383_v45 }
  0x84   : > { %v2488_v61 = vadd.f32 %v2472_v54, %v2338_v53  ;;  %v2489_v24 = vadd.f32 %v2473_v43, %v2339_v44  ;;  %v2034_v4 = vor.u32 %v2033_v22, %v1969_v3  ;;  %v2179_v32 = vadd.bf16 %v2171_v27, %v2159_v10 }
  0x85   : > { %v2293_v11 = vadd.bf16 %v3371_v7, %v2210_v60  ;;  %v1306_v57 = vshrl.u32 %v3316_v62, 16  ;;  %v4331_v53 = vsel %vm3830_vm4, 0, %v1974_v33  ;;  %v1309_v54 = vshll.u32 %v3316_v62, 16 }
  0x86   : > { %v2511_v38 = vadd.f32 %v4159_v23, %v2488_v61  ;;  %v2512_v39 = vadd.f32 %v4159_v23, %v2489_v24  ;;  %v4335_v44 = vsel %vm3838_vm5, %v2034_v4, 0  ;;  %v2190_v37 = vunpack.c.l.bf16 %v2179_v32 }
  0x87   : > { %v2191_v21 = vunpack.c.h.bf16 %v2179_v32  ;;  %v2313_v27 = vadd.bf16 %v2305_v56, %v2293_v11  ;;  %v2360_v60 = vmul.bf16 %v4058_v58, %v4331_v53  ;;  %v2455_v36 = vmul.bf16 %v4087_v9, %v4335_v44 }
  0x88   : > { %v2527_v16 = vmax.f32 %v2511_v38, 0.0  ;;  %v2528_v3 = vmax.f32 %v2512_v39, 0.0  ;;  %v1308_v1 = vrot.slane %v1306_v57, 7  ;;  %v1413_v43 = vmul.bf16 %v3765_v17, %v4171_v34 }
  0x89   : > { %v2324_v35 = vunpack.c.l.bf16 %v2313_v27  ;;  %v2325_v22 = vunpack.c.h.bf16 %v2313_v27  ;;  %v2443_v10 = vadd.bf16 %v3380_v48, %v2360_v60  ;;  %v1368_v61 = vrot.slane %v1309_v54, 1 }
  0x8a   : > { %v2541_v51 = vpack.c.bf16 %v2528_v3, %v2527_v16  ;;  %v1311_v7 = vor.u32 %v1309_v54, %v1308_v1  ;;  %v1436_v39 = vmul.bf16 %v3820_v42, %v4110_v15  ;;  %v1437_v56 = vmul.bf16 %v3820_v42, %v4113_v52 }
  0x8b   : > { %v2340_v24 = vadd.f32 %v2324_v35, %v2190_v37  ;;  %v2341_v45 = vadd.f32 %v2325_v22, %v2191_v21  ;;  %v2463_v62 = vadd.bf16 %v2455_v36, %v2443_v10  ;;  %v1508_v34 = vmul.bf16 %v3768_v19, %v4175_v29  ;;  %v4361_v37 = vld [vmem:[%s3762_s25 + $0x30] sm:$0xf]  ;;  %v4364_v29 = vld [vmem:[%s3762_s25 + $0x34] sm:$0xf]  ;;  %v4850_v35 = vld [vmem:[#allocation3_spill] sm:$0xff] }
  0x8c   : > { %3469 = vmatprep.mubr.msk.bf16.mxu1 %vm2567_vm6, %v2541_v51  ;;  %v4352_v48 = vsel %vm3830_vm4, 0, %v1311_v7  ;;  %v1369_v33 = vor.u32 %v1368_v61, %v1306_v57  ;;  %v3325_v4 = vcombine.low %v1436_v39, %v1437_v56  ;;  %v1547_v15 = vmul.bf16 %v3771_v20, %v4226_v13 }
  0x8d   : > { %v2474_v32 = vunpack.c.l.bf16 %v2463_v62  ;;  %v2475_v11 = vunpack.c.h.bf16 %v2463_v62  ;;  %v1570_v52 = vmul.bf16 %v3824_v46, %v4187_v30  ;;  %v1571_v38 = vmul.bf16 %v3824_v46, %v4190_v41 }
  0x8e   : > { %v4368_v21 = vsel %vm3838_vm5, %v1369_v33, 0  ;;  %v1496_v57 = vadd.bf16 %v3325_v4, %v1413_v43  ;;  %v1642_v16 = vmul.bf16 %v3785_v25, %v4230_v59  ;;  %v1697_v3 = vmul.bf16 %v3788_v26, %v4352_v48 }
  0x8f   : > { %v2490_v27 = vadd.f32 %v2474_v32, %v2340_v24  ;;  %v2491_v60 = vadd.f32 %v2475_v11, %v2341_v45  ;;  %v3334_v36 = vcombine.low %v1570_v52, %v1571_v38  ;;  %v1720_v1 = vmul.bf16 %v3826_v47, %v4314_v5 }
  0x90   : > { %v1516_v54 = vadd.bf16 %v1508_v34, %v1496_v57  ;;  %v1721_v51 = vmul.bf16 %v3826_v47, %v4317_v8  ;;  %v1792_v22 = vmul.bf16 %v4850_v35, %v4368_v21  ;;  %v3317_v43 = vcombine.low %v4361_v37, %v4364_v29 }
  0x91   : > { %v2513_v10 = vadd.f32 %v4159_v23, %v2490_v27  ;;  %v2514_v7 = vadd.f32 %v4159_v23, %v2491_v60  ;;  %v1630_v61 = vadd.bf16 %v3334_v36, %v1547_v15  ;;  %v1414_v39 = vmul.bf16 %v3765_v17, %v4226_v13 }
  0x92   : > { %v1528_v56 = vunpack.c.l.bf16 %v1516_v54  ;;  %v1529_v24 = vunpack.c.h.bf16 %v1516_v54  ;;  %v3343_v45 = vcombine.low %v1720_v1, %v1721_v51  ;;  %v1313_v62 = vshrl.u32 %v3317_v43, 16 }
  0x93   : > { %v2529_v34 = vmax.f32 %v2513_v10, 0.0  ;;  %v2530_v33 = vmax.f32 %v2514_v7, 0.0  ;;  %v1650_v4 = vadd.bf16 %v1642_v16, %v1630_v61  ;;  %v1316_v32 = vshll.u32 %v3317_v43, 16 }
  0x94   : > { %v1780_v11 = vadd.bf16 %v3343_v45, %v1697_v3  ;;  %v1315_v52 = vrot.slane %v1313_v62, 7  ;;  %v1438_v38 = vmul.bf16 %v3820_v42, %v4187_v30  ;;  %v1439_v15 = vmul.bf16 %v3820_v42, %v4190_v41 }
  0x95   : > { %v2542_v57 = vpack.c.bf16 %v2530_v33, %v2529_v34  ;;  %v1662_v27 = vunpack.c.l.bf16 %v1650_v4  ;;  %v1663_v13 = vunpack.c.h.bf16 %v1650_v4  ;;  %v1370_v60 = vrot.slane %v1316_v32, 1  ;;  %v1188_v4 = vld [vmem:[%s3863_s19 + $0x2c] sm:$0xf] }
  0x96   : > { %v1800_v36 = vadd.bf16 %v1792_v22, %v1780_v11  ;;  %v1318_v1 = vor.u32 %v1316_v32, %v1315_v52  ;;  %v3326_v54 = vcombine.low %v1438_v38, %v1439_v15  ;;  %v1509_v51 = vmul.bf16 %v3768_v19, %v4230_v59 }
  0x97   : > { %3470 = vmatmul.mubr.msk.bf16.gmra.mrb[4].mxu1 %vm2567_vm6, %v2542_v57  ;;  %v1678_v16 = vadd.f32 %v1662_v27, %v1528_v56  ;;  %v1679_v3 = vadd.f32 %v1663_v13, %v1529_v24  ;;  %v1371_v30 = vor.u32 %v1370_v60, %v1313_v62  ;;  %v1548_v41 = vmul.bf16 %v3771_v20, %v4352_v48 }
  0x98   : > { %v1812_v43 = vunpack.c.l.bf16 %v1800_v36  ;;  %v1813_v10 = vunpack.c.h.bf16 %v1800_v36  ;;  %v4398_v22 = vsel %vm3830_vm4, 0, %v1318_v1  ;;  %v1497_v7 = vadd.bf16 %v3326_v54, %v1414_v39  ;;  %v1187_v39 = vld [vmem:[%s3863_s19 + $0x28] sm:$0xf] }
  0x99   : > { %v4402_v59 = vsel %vm3838_vm5, %v1371_v30, 0  ;;  %v1572_v61 = vmul.bf16 %v3824_v46, %v4314_v5  ;;  %v1573_v56 = vmul.bf16 %v3824_v46, %v4317_v8  ;;  %v1643_v24 = vmul.bf16 %v3785_v25, %v4368_v21 }
  0x9a   : > { %v1828_v45 = vadd.f32 %v1812_v43, %v1678_v16  ;;  %v1829_v62 = vadd.f32 %v1813_v10, %v1679_v3  ;;  %v1517_v34 = vadd.bf16 %v1509_v51, %v1497_v7  ;;  %v1698_v33 = vmul.bf16 %v3788_v26, %v4398_v22 }
  0x9b   : > { %v3335_v32 = vcombine.low %v1572_v61, %v1573_v56  ;;  %v1722_v11 = vmul.bf16 %v3826_v47, %v4361_v37  ;;  %v1723_v52 = vmul.bf16 %v3826_v47, %v4364_v29  ;;  %v1793_v38 = vmul.bf16 %v4850_v35, %v4402_v59 }
  0x9c   : > { %v1851_v15 = vadd.f32 %v3997_v31, %v1828_v45  ;;  %v1852_v57 = vadd.f32 %v3997_v31, %v1829_v62  ;;  %v1530_v27 = vunpack.c.l.bf16 %v1517_v34  ;;  %v1531_v13 = vunpack.c.h.bf16 %v1517_v34  ;;  %v4851_v45 = vld [vmem:[#allocation4_spill] sm:$0xff] }
  0x9d   : > { %v1631_v60 = vadd.bf16 %v3335_v32, %v1548_v41  ;;  %v3344_v36 = vcombine.low %v1722_v11, %v1723_v52  ;;  %v4425_v1 = vmul.bf16 %v1187_v39, %v4314_v5  ;;  %v4428_v54 = vmul.bf16 %v1188_v4, %v4317_v8 }
  0x9e   : > { %v1867_v51 = vmax.f32 %v1851_v15, 0.0  ;;  %v1868_v16 = vmax.f32 %v1852_v57, 0.0  ;;  %v2077_v3 = vmul.bf16 %v4843_v28, %v4283_v6  ;;  %v2100_v30 = vmul.bf16 %v4047_v40, %v4242_v14  ;;  %v4852_v14 = vld [vmem:[#allocation8_spill] sm:$0xff] }
  0x9f   : > { %v1651_v43 = vadd.bf16 %v1643_v24, %v1631_v60  ;;  %v1781_v10 = vadd.bf16 %v3344_v36, %v1698_v33  ;;  %v3354_v41 = vcombine.low %v4425_v1, %v4428_v54  ;;  %v2101_v7 = vmul.bf16 %v4047_v40, %v4247_v12 }
  0xa0   : > { %v1879_v61 = vpack.c.bf16 %v1868_v16, %v1867_v51  ;;  %v2172_v56 = vmul.bf16 %v3976_v18, %v4287_v2  ;;  %v2211_v6 = vmul.bf16 %v4052_v50, %v4331_v53  ;;  %v2234_v62 = vmul.bf16 %v4852_v14, %v4851_v45  ;;  %v4853_v2 = vld [vmem:[#allocation7_spill] sm:$0xff] }
  0xa1   : > { %v1664_v34 = vunpack.c.l.bf16 %v1651_v43  ;;  %v1665_v24 = vunpack.c.h.bf16 %v1651_v43  ;;  %v1801_v33 = vadd.bf16 %v1793_v38, %v1781_v10  ;;  %v1976_v39 = vshrl.u32 %v3354_v41, 16  ;;  %v1189_v43 = vld [vmem:[%s3863_s19 + $0x30] sm:$0xf] }
  0xa2   : > { %3493 = vmatprep.mubr.msk.bf16.mxu0 %vm2567_vm6, %v1879_v61  ;;  %v1979_v4 = vshll.u32 %v3354_v41, 16  ;;  %v3363_v32 = vcombine.low %v2100_v30, %v2101_v7  ;;  %v2235_v12 = vmul.bf16 %v4852_v14, %v4294_v63  ;;  %v2306_v11 = vmul.bf16 %v4853_v2, %v4335_v44 }
  0xa3   : > { %v1680_v52 = vadd.f32 %v1664_v34, %v1530_v27  ;;  %v1681_v15 = vadd.f32 %v1665_v24, %v1531_v13  ;;  %v1814_v57 = vunpack.c.l.bf16 %v1801_v33  ;;  %v1815_v60 = vunpack.c.h.bf16 %v1801_v33 }
  0xa4   : > { %v1978_v36 = vrot.slane %v1976_v39, 7  ;;  %v2035_v51 = vrot.slane %v1979_v4, 1  ;;  %v2160_v38 = vadd.bf16 %v3363_v32, %v2077_v3  ;;  %v3372_v16 = vcombine.low %v2234_v62, %v2235_v12  ;;  %v1190_v62 = vld [vmem:[%s3863_s19 + $0x34] sm:$0xf] }
  0xa5   : > { %v1830_v10 = vadd.f32 %v1814_v57, %v1680_v52  ;;  %v1831_v41 = vadd.f32 %v1815_v60, %v1681_v15  ;;  %v2384_v30 = vmul.bf16 %v4117_v0, %v4425_v1  ;;  %v2385_v7 = vmul.bf16 %v4117_v0, %v4428_v54 }
  0xa6   : > { %v1981_v61 = vor.u32 %v1979_v4, %v1978_v36  ;;  %v2036_v27 = vor.u32 %v2035_v51, %v1976_v39  ;;  %v2180_v13 = vadd.bf16 %v2172_v56, %v2160_v38  ;;  %v2294_v34 = vadd.bf16 %v3372_v16, %v2211_v6 }
  0xa7   : > { %v1853_v24 = vadd.f32 %v3997_v31, %v1830_v10  ;;  %v1854_v33 = vadd.f32 %v3997_v31, %v1831_v41  ;;  %v3381_v3 = vcombine.low %v2384_v30, %v2385_v7  ;;  %v4461_v32 = vmul.bf16 %v1189_v43, %v4361_v37 }
  0xa8   : > { %v4465_v12 = vsel %vm3830_vm4, 0, %v1981_v61  ;;  %v4469_v52 = vsel %vm3838_vm5, %v2036_v27, 0  ;;  %v2192_v56 = vunpack.c.l.bf16 %v2180_v13  ;;  %v2193_v6 = vunpack.c.h.bf16 %v2180_v13  ;;  %v4497_v13 = vld [vmem:[%s3762_s25 + $0x38] sm:$0xf] }
  0xa9   : > { %v1869_v39 = vmax.f32 %v1853_v24, 0.0  ;;  %v1870_v4 = vmax.f32 %v1854_v33, 0.0  ;;  %v2314_v31 = vadd.bf16 %v2306_v11, %v2294_v34  ;;  %v2361_v15 = vmul.bf16 %v4058_v58, %v4465_v12  ;;  %v4504_v33 = vld [vmem:[%s3762_s25 + $0x3c] sm:$0xf]  ;;  %s1140_s25 = sshrl.u32 %s4880_s27, 16  ;;  %s4641_s27 = scalar_lea.vmem %s4795_s5, %s3285_s23 }
  0xaa   : > { %v2456_v57 = vmul.bf16 %v4087_v9, %v4469_v52  ;;  %v4476_v60 = vmul.bf16 %v1190_v62, %v4364_v29  ;;  %v2078_v36 = vmul.bf16 %v4843_v28, %v4331_v53  ;;  %v2102_v51 = vmul.bf16 %v4047_v40, %v4851_v45  ;;  %s1151_s28 = sshll.u32 %s1140_s25, 16 }
  0xab   : > { %v1880_v38 = vpack.c.bf16 %v1870_v4, %v1869_v39  ;;  %v2326_v16 = vunpack.c.l.bf16 %v2314_v31  ;;  %v2327_v11 = vunpack.c.h.bf16 %v2314_v31  ;;  %v2444_v43 = vadd.bf16 %v3381_v3, %v2361_v15  ;;  %s1152_s0 = sor.u32 %s1151_s28, %s1140_s25 }
  0xac   : > { %v3355_v10 = vcombine.low %v4461_v32, %v4476_v60  ;;  %v2103_v41 = vmul.bf16 %v4047_v40, %v4294_v63  ;;  %v2173_v53 = vmul.bf16 %v3976_v18, %v4335_v44  ;;  %v2212_v45 = vmul.bf16 %v4052_v50, %v4465_v12 }
  0xad   : > { %3494 = vmatmul.mubr.msk.bf16.gmra.mrb[8].mxu0 %vm2567_vm6, %v1880_v38  ;;  %v2342_v30 = vadd.f32 %v2326_v16, %v2192_v56  ;;  %v2343_v7 = vadd.f32 %v2327_v11, %v2193_v6  ;;  %v2464_v61 = vadd.bf16 %v2456_v57, %v2444_v43  ;;  %v2236_v27 = vmul.bf16 %v4852_v14, %v4425_v1 }
  0xae   : > { %v1983_v34 = vshrl.u32 %v3355_v10, 16  ;;  %v1986_v63 = vshll.u32 %v3355_v10, 16  ;;  %v3364_v24 = vcombine.low %v2102_v51, %v2103_v41  ;;  %v2237_v44 = vmul.bf16 %v4852_v14, %v4428_v54 }
  0xaf   : > { %v2476_v3 = vunpack.c.l.bf16 %v2464_v61  ;;  %v2477_v62 = vunpack.c.h.bf16 %v2464_v61  ;;  %v2307_v56 = vmul.bf16 %v4853_v2, %v4469_v52  ;;  %v2386_v6 = vmul.bf16 %v4117_v0, %v4461_v32 }
  0xb0   : > { %v1985_v39 = vrot.slane %v1983_v34, 7  ;;  %v2037_v4 = vrot.slane %v1986_v63, 1  ;;  %v2161_v31 = vadd.bf16 %v3364_v24, %v2078_v36  ;;  %v3373_v15 = vcombine.low %v2236_v27, %v2237_v44 }
  0xb1   : > { %v2492_v57 = vadd.f32 %v2476_v3, %v2342_v30  ;;  %v2493_v51 = vadd.f32 %v2477_v62, %v2343_v7  ;;  %v2387_v38 = vmul.bf16 %v4117_v0, %v4476_v60  ;;  %v3318_v16 = vcombine.low %v4497_v13, %v4504_v33 }
  0xb2   : > { %v1988_v11 = vor.u32 %v1986_v63, %v1985_v39  ;;  %v2038_v43 = vor.u32 %v2037_v4, %v1983_v34  ;;  %v2181_v10 = vadd.bf16 %v2173_v53, %v2161_v31  ;;  %v2295_v41 = vadd.bf16 %v3373_v15, %v2212_v45 }
  0xb3   : > { %v2515_v61 = vadd.f32 %v4159_v23, %v2492_v57  ;;  %v2516_v36 = vadd.f32 %v4159_v23, %v2493_v51  ;;  %v3382_v30 = vcombine.low %v2386_v6, %v2387_v38  ;;  %v1320_v7 = vshrl.u32 %v3318_v16, 16 }
  0xb4   : > { %v4524_v27 = vsel %vm3830_vm4, 0, %v1988_v11  ;;  %v4528_v24 = vsel %vm3838_vm5, %v2038_v43, 0  ;;  %v2194_v63 = vunpack.c.l.bf16 %v2181_v10  ;;  %v2195_v44 = vunpack.c.h.bf16 %v2181_v10 }
  0xb5   : > { %v2531_v34 = vmax.f32 %v2515_v61, 0.0  ;;  %v2532_v53 = vmax.f32 %v2516_v36, 0.0  ;;  %v2315_v45 = vadd.bf16 %v2307_v56, %v2295_v41  ;;  %v2362_v3 = vmul.bf16 %v4058_v58, %v4524_v27 }
  0xb6   : > { %v2457_v62 = vmul.bf16 %v4087_v9, %v4528_v24  ;;  %v1322_v6 = vrot.slane %v1320_v7, 7  ;;  %v1323_v39 = vshll.u32 %v3318_v16, 16  ;;  %v1415_v4 = vmul.bf16 %v3765_v17, %v4352_v48 }
  0xb7   : > { %v2543_v31 = vpack.c.bf16 %v2532_v53, %v2531_v34  ;;  %v2328_v15 = vunpack.c.l.bf16 %v2315_v45  ;;  %v2329_v57 = vunpack.c.h.bf16 %v2315_v45  ;;  %v2445_v51 = vadd.bf16 %v3382_v30, %v2362_v3  ;;  %v1149_v3 = vld [vmem:[%s993_s1] sm:$0xf] }
  0xb8   : > { %v1325_v56 = vor.u32 %v1323_v39, %v1322_v6  ;;  %v1372_v38 = vrot.slane %v1323_v39, 1  ;;  %v1440_v11 = vmul.bf16 %v3820_v42, %v4314_v5  ;;  %v1441_v43 = vmul.bf16 %v3820_v42, %v4317_v8 }
  0xb9   : > { %3473 = vmatprep.mubr.msk.bf16.mxu1 %vm2567_vm6, %v2543_v31  ;;  %v2344_v48 = vadd.f32 %v2328_v15, %v2194_v63  ;;  %v2345_v16 = vadd.f32 %v2329_v57, %v2195_v44  ;;  %v2465_v10 = vadd.bf16 %v2457_v62, %v2445_v51  ;;  %v1510_v41 = vmul.bf16 %v3768_v19, %v4368_v21  ;;  %v1150_v15 = vld [vmem:[%s993_s1 + $0x4] sm:$0xf]  ;;  %s4704_s1 = scalar_lea.vmem %s4803_s13, %s3755_s22  ;;  %s3308_s22 = sshll.u32 %s4866_s30, 1 }
  0xba   : > { %v4554_v5 = vsel %vm3830_vm4, 0, %v1325_v56  ;;  %v1373_v8 = vor.u32 %v1372_v38, %v1320_v7  ;;  %v3327_v61 = vcombine.low %v1440_v11, %v1441_v43  ;;  %v1549_v36 = vmul.bf16 %v3771_v20, %v4398_v22 }
  0xbb   : > { %v2478_v30 = vunpack.c.l.bf16 %v2465_v10  ;;  %v2479_v63 = vunpack.c.h.bf16 %v2465_v10  ;;  %v1574_v44 = vmul.bf16 %v3824_v46, %v4361_v37  ;;  %v1575_v21 = vmul.bf16 %v3824_v46, %v4364_v29 }
  0xbc   : > { %v4566_v34 = vsel %vm3838_vm5, %v1373_v8, 0  ;;  %v1498_v53 = vadd.bf16 %v3327_v61, %v1415_v4  ;;  %v1644_v7 = vmul.bf16 %v3785_v25, %v4402_v59  ;;  %v1699_v45 = vmul.bf16 %v3788_v26, %v4554_v5 }
  0xbd   : > { %v2494_v62 = vadd.f32 %v2478_v30, %v2344_v48  ;;  %v2495_v6 = vadd.f32 %v2479_v63, %v2345_v16  ;;  %v3336_v39 = vcombine.low %v1574_v44, %v1575_v21  ;;  %v1724_v31 = vmul.bf16 %v3826_v47, %v4497_v13 }
  0xbe   : > { %v1518_v57 = vadd.bf16 %v1510_v41, %v1498_v53  ;;  %v1725_v51 = vmul.bf16 %v3826_v47, %v4504_v33  ;;  %v1794_v4 = vmul.bf16 %v4850_v35, %v4566_v34  ;;  %v1153_v56 = vstv %s1152_s0  ;;  %s1111_s0 = sadd.s32 %s3308_s22, %s4882_s29 }
  0xbf   : > { %v2517_v38 = vadd.f32 %v4159_v23, %v2494_v62  ;;  %v2518_v11 = vadd.f32 %v4159_v23, %v2495_v6  ;;  %v1632_v43 = vadd.bf16 %v3336_v39, %v1549_v36  ;;  %v4580_v48 = vmul.bf16 %v1153_v56, %v1149_v3  ;;  %s3309_s24 = sshll.u32 %s1111_s0, 3 }
  0xc0   : > { %v1532_v16 = vunpack.c.l.bf16 %v1518_v57  ;;  %v1533_v10 = vunpack.c.h.bf16 %v1518_v57  ;;  %v3345_v8 = vcombine.low %v1724_v31, %v1725_v51  ;;  %v4582_v61 = vmul.bf16 %v1153_v56, %v1150_v15  ;;  %s1113_s10 = scalar_lea.vmem %s4804_s14, %s3309_s24 }
  0xc1   : > { %v2533_v41 = vmax.f32 %v2517_v38, 0.0  ;;  %v2534_v30 = vmax.f32 %v2518_v11, 0.0  ;;  %v1652_v63 = vadd.bf16 %v1644_v7, %v1632_v43  ;;  %v1416_v44 = vmul.bf16 %v3765_v17, %v4398_v22  ;;  %v1191_v38 = vld [vmem:[%s3863_s19 + $0x38] sm:$0xf] }
  0xc2   : > { %v1782_v21 = vadd.bf16 %v3345_v8, %v1699_v45  ;;  %v3319_v53 = vcombine.low %v4580_v48, %v4582_v61  ;;  %v1442_v23 = vmul.bf16 %v3820_v42, %v4361_v37  ;;  %v1443_v36 = vmul.bf16 %v3820_v42, %v4364_v29 }
  0xc3   : > { %v2544_v3 = vpack.c.bf16 %v2534_v30, %v2533_v41  ;;  %v1666_v62 = vunpack.c.l.bf16 %v1652_v63  ;;  %v1667_v6 = vunpack.c.h.bf16 %v1652_v63  ;;  %v1511_v7 = vmul.bf16 %v3768_v19, %v4402_v59 }
  0xc4   : > { %v1802_v39 = vadd.bf16 %v1794_v4, %v1782_v21  ;;  %v1327_v31 = vshrl.u32 %v3319_v53, 16  ;;  %v1330_v17 = vshll.u32 %v3319_v53, 16  ;;  %v3328_v22 = vcombine.low %v1442_v23, %v1443_v36  ;;  %v1192_v21 = vld [vmem:[%s3863_s19 + $0x3c] sm:$0xf] }
  0xc5   : > { %3474 = vmatmul.mubr.msk.bf16.gmra.mrb[8].mxu1 %vm2567_vm6, %v2544_v3  ;;  %v1682_v45 = vadd.f32 %v1666_v62, %v1532_v16  ;;  %v1683_v15 = vadd.f32 %v1667_v6, %v1533_v10  ;;  %v1550_v37 = vmul.bf16 %v3771_v20, %v4554_v5  ;;  %v1576_v42 = vmul.bf16 %v3824_v46, %v4497_v13 }
  0xc6   : > { %v1816_v29 = vunpack.c.l.bf16 %v1802_v39  ;;  %v1817_v57 = vunpack.c.h.bf16 %v1802_v39  ;;  %v1329_v51 = vrot.slane %v1327_v31, 7  ;;  %v1374_v56 = vrot.slane %v1330_v17, 1 }
  0xc7   : > { %v1499_v19 = vadd.bf16 %v3328_v22, %v1416_v44  ;;  %v1577_v59 = vmul.bf16 %v3824_v46, %v4504_v33  ;;  %v1645_v4 = vmul.bf16 %v3785_v25, %v4566_v34  ;;  %v1726_v11 = vmul.bf16 %v3826_v47, %v4580_v48  ;;  %v3569_v46 = vld [vmem:[%s4798_s8] ss:$0 sm:$0xff] }
  0xc8   : > { %v1832_v20 = vadd.f32 %v1816_v29, %v1682_v45  ;;  %v1833_v5 = vadd.f32 %v1817_v57, %v1683_v15  ;;  %v1332_v43 = vor.u32 %v1330_v17, %v1329_v51  ;;  %v1375_v16 = vor.u32 %v1374_v56, %v1327_v31 }
  0xc9   : > { %v1519_v10 = vadd.bf16 %v1511_v7, %v1499_v19  ;;  %v3337_v8 = vcombine.low %v1576_v42, %v1577_v59  ;;  %v1727_v41 = vmul.bf16 %v3826_v47, %v4582_v61  ;;  %v4609_v30 = vmul.bf16 %v1191_v38, %v4497_v13 }
  0xca   : > { %v1855_v25 = vadd.f32 %v3569_v46, %v1832_v20  ;;  %v1856_v34 = vadd.f32 %v3569_v46, %v1833_v5  ;;  %v1355_v63 = vsel %vm3830_vm4, 0, %v1332_v43  ;;  %v1398_v44 = vsel %vm3838_vm5, %v1375_v16, 0 }
  0xcb   : > { %v1534_v53 = vunpack.c.l.bf16 %v1519_v10  ;;  %v1535_v23 = vunpack.c.h.bf16 %v1519_v10  ;;  %v1633_v36 = vadd.bf16 %v3337_v8, %v1550_v37  ;;  %v1700_v47 = vmul.bf16 %v3788_v26, %v1355_v63 }
  0xcc   : > { %v1871_v13 = vmax.f32 %v1855_v25, 0.0  ;;  %v1872_v3 = vmax.f32 %v1856_v34, 0.0  ;;  %v3346_v62 = vcombine.low %v1726_v11, %v1727_v41  ;;  %v1795_v6 = vmul.bf16 %v4850_v35, %v1398_v44  ;;  %v1209_v11 = vld [vmem:[%s4641_s27] sm:$0xf] }
  0xcd   : > { %v1653_v7 = vadd.bf16 %v1645_v4, %v1633_v36  ;;  %v4622_v39 = vmul.bf16 %v1192_v21, %v4504_v33  ;;  %v2079_v31 = vmul.bf16 %v4843_v28, %v4465_v12  ;;  %v2104_v17 = vmul.bf16 %v4047_v40, %v4425_v1 }
  0xce   : > { %v1881_v22 = vpack.c.bf16 %v1872_v3, %v1871_v13  ;;  %v1783_v45 = vadd.bf16 %v3346_v62, %v1700_v47  ;;  %v2105_v26 = vmul.bf16 %v4047_v40, %v4428_v54  ;;  %v2174_v15 = vmul.bf16 %v3976_v18, %v4469_v52  ;;  %v1210_v13 = vld [vmem:[%s4641_s27 + $0x4] sm:$0xf] }
  0xcf   : > { %v1668_v37 = vunpack.c.l.bf16 %v1653_v7  ;;  %v1669_v35 = vunpack.c.h.bf16 %v1653_v7  ;;  %v3356_v33 = vcombine.low %v4609_v30, %v4622_v39  ;;  %v2213_v42 = vmul.bf16 %v4052_v50, %v4524_v27 }
  0xd0   : > { %3497 = vmatprep.mubr.msk.bf16.mxu0 %vm2567_vm6, %v1881_v22  ;;  %v1803_v1 = vadd.bf16 %v1795_v6, %v1783_v45  ;;  %v3365_v54 = vcombine.low %v2104_v17, %v2105_v26  ;;  %v2238_v12 = vmul.bf16 %v4852_v14, %v4461_v32  ;;  %v2239_v52 = vmul.bf16 %v4852_v14, %v4476_v60 }
  0xd1   : > { %v1684_v29 = vadd.f32 %v1668_v37, %v1534_v53  ;;  %v1685_v57 = vadd.f32 %v1669_v35, %v1535_v23  ;;  %v1990_v51 = vshrl.u32 %v3356_v33, 16  ;;  %v1993_v56 = vshll.u32 %v3356_v33, 16 }
  0xd2   : > { %v1818_v38 = vunpack.c.l.bf16 %v1803_v1  ;;  %v1819_v19 = vunpack.c.h.bf16 %v1803_v1  ;;  %v2162_v59 = vadd.bf16 %v3365_v54, %v2079_v31  ;;  %v3374_v4 = vcombine.low %v2238_v12, %v2239_v52 }
  0xd3   : > { %v1992_v20 = vrot.slane %v1990_v51, 7  ;;  %v2039_v5 = vrot.slane %v1993_v56, 1  ;;  %v2308_v43 = vmul.bf16 %v4853_v2, %v4528_v24  ;;  %v2388_v16 = vmul.bf16 %v4117_v0, %v4609_v30 }
  0xd4   : > { %v1834_v10 = vadd.f32 %v1818_v38, %v1684_v29  ;;  %v1835_v8 = vadd.f32 %v1819_v19, %v1685_v57  ;;  %v2182_v41 = vadd.bf16 %v2174_v15, %v2162_v59  ;;  %v2296_v25 = vadd.bf16 %v3374_v4, %v2213_v42 }
  0xd5   : > { %v1995_v34 = vor.u32 %v1993_v56, %v1992_v20  ;;  %v2040_v63 = vor.u32 %v2039_v5, %v1990_v51  ;;  %v2389_v44 = vmul.bf16 %v4117_v0, %v4622_v39  ;;  %v1211_v21 = vmul.bf16 %v1209_v11, %v4580_v48 }
  0xd6   : > { %v1857_v53 = vadd.f32 %v3569_v46, %v1834_v10  ;;  %v1858_v23 = vadd.f32 %v3569_v46, %v1835_v8  ;;  %v2196_v36 = vunpack.c.l.bf16 %v2182_v41  ;;  %v2197_v47 = vunpack.c.h.bf16 %v2182_v41 }
  0xd7   : > { %v2021_v3 = vsel %vm3830_vm4, 0, %v1995_v34  ;;  %v2061_v62 = vsel %vm3838_vm5, %v2040_v63, 0  ;;  %v2316_v6 = vadd.bf16 %v2308_v43, %v2296_v25  ;;  %v3383_v7 = vcombine.low %v2388_v16, %v2389_v44 }
  0xd8   : > { %v1873_v31 = vmax.f32 %v1857_v53, 0.0  ;;  %v1874_v17 = vmax.f32 %v1858_v23, 0.0  ;;  %v2363_v22 = vmul.bf16 %v4058_v58, %v2021_v3  ;;  %v2458_v45 = vmul.bf16 %v4087_v9, %v2061_v62 }
  0xd9   : > { %v2330_v48 = vunpack.c.l.bf16 %v2316_v6  ;;  %v2331_v26 = vunpack.c.h.bf16 %v2316_v6  ;;  %v1212_v46 = vmul.bf16 %v1210_v13, %v4582_v61  ;;  %v2080_v15 = vmul.bf16 %v4843_v28, %v4524_v27 }
  0xda   : > { %v1882_v37 = vpack.c.bf16 %v1874_v17, %v1873_v31  ;;  %v2446_v35 = vadd.bf16 %v3383_v7, %v2363_v22  ;;  %v2106_v33 = vmul.bf16 %v4047_v40, %v4461_v32  ;;  %v2107_v42 = vmul.bf16 %v4047_v40, %v4476_v60 }
  0xdb   : > { %v2346_v1 = vadd.f32 %v2330_v48, %v2196_v36  ;;  %v2347_v54 = vadd.f32 %v2331_v26, %v2197_v47  ;;  %v3357_v12 = vcombine.low %v1211_v21, %v1212_v46  ;;  %v2175_v52 = vmul.bf16 %v3976_v18, %v4528_v24 }
  0xdc   : > { %3498 = vmatmul.mubr.msk.bf16.gmra.mrb[12].mxu0 %vm2567_vm6, %v1882_v37  ;;  %v2466_v61 = vadd.bf16 %v2458_v45, %v2446_v35  ;;  %v3366_v29 = vcombine.low %v2106_v33, %v2107_v42  ;;  %v2214_v28 = vmul.bf16 %v4052_v50, %v2021_v3  ;;  %v2240_v27 = vmul.bf16 %v4852_v14, %v4609_v30  ;;  %v4695_v37 = vld [vmem:[%s4802_s12] ss:$0 sm:$0xff] }
  0xdd   : > { %v1997_v57 = vshrl.u32 %v3357_v12, 16  ;;  %v2000_v32 = vshll.u32 %v3357_v12, 16  ;;  %v2241_v40 = vmul.bf16 %v4852_v14, %v4622_v39  ;;  %v2309_v60 = vmul.bf16 %v4853_v2, %v2061_v62  ;;  %v3570_v14 = vld [vmem:[%s4799_s9] ss:$0 sm:$0xff] }
  0xde   : > { %v2480_v51 = vunpack.c.l.bf16 %v2466_v61  ;;  %v2481_v56 = vunpack.c.h.bf16 %v2466_v61  ;;  %v2163_v38 = vadd.bf16 %v3366_v29, %v2080_v15  ;;  %v2390_v18 = vmul.bf16 %v4117_v0, %v1211_v21 }
  0xdf   : > { %v1999_v24 = vrot.slane %v1997_v57, 7  ;;  %v2041_v19 = vrot.slane %v2000_v32, 1  ;;  %v3375_v59 = vcombine.low %v2240_v27, %v2241_v40  ;;  %v2391_v50 = vmul.bf16 %v4117_v0, %v1212_v46 }
  0xe0   : > { %v2496_v4 = vadd.f32 %v2480_v51, %v2346_v1  ;;  %v2497_v11 = vadd.f32 %v2481_v56, %v2347_v54  ;;  %v2183_v30 = vadd.bf16 %v2175_v52, %v2163_v38 }
  0xe1   : > { %v2002_v20 = vor.u32 %v2000_v32, %v1999_v24  ;;  %v2042_v5 = vor.u32 %v2041_v19, %v1997_v57  ;;  %v2297_v43 = vadd.bf16 %v3375_v59, %v2214_v28  ;;  %v3384_v10 = vcombine.low %v2390_v18, %v2391_v50 }
  0xe2   : > { %v2519_v2 = vadd.f32 %v3570_v14, %v2496_v4  ;;  %v2520_v39 = vadd.f32 %v3570_v14, %v2497_v11  ;;  %v2198_v16 = vunpack.c.l.bf16 %v2183_v30  ;;  %v2199_v41 = vunpack.c.h.bf16 %v2183_v30 }
  0xe3   : > { %v2022_v8 = vsel %vm3830_vm4, 0, %v2002_v20  ;;  %v2062_v0 = vsel %vm3838_vm5, %v2042_v5, 0  ;;  %v2317_v25 = vadd.bf16 %v2309_v60, %v2297_v43 }
  0xe4   : > { %v2535_v34 = vmax.f32 %v2519_v2, 0.0  ;;  %v2536_v63 = vmax.f32 %v2520_v39, 0.0  ;;  %v2364_v44 = vmul.bf16 %v4058_v58, %v2022_v8  ;;  %v2459_v21 = vmul.bf16 %v4087_v9, %v2062_v0 }
  0xe5   : > { %v2332_v53 = vunpack.c.l.bf16 %v2317_v25  ;;  %v2333_v23 = vunpack.c.h.bf16 %v2317_v25 }
  0xe6   : > { %v2545_v36 = vpack.c.bf16 %v2536_v63, %v2535_v34  ;;  %v2447_v47 = vadd.bf16 %v3384_v10, %v2364_v44 }
  0xe7   : > { %v2348_v13 = vadd.f32 %v2332_v53, %v2198_v16  ;;  %v2349_v3 = vadd.f32 %v2333_v23, %v2199_v41 }
  0xe8   : > { %3477 = vmatprep.mubr.msk.bf16.mxu1 %vm2567_vm6, %v2545_v36  ;;  %v2467_v49 = vadd.bf16 %v2459_v21, %v2447_v47 }
  0xea   : > { %v2482_v62 = vunpack.c.l.bf16 %v2467_v49  ;;  %v2483_v55 = vunpack.c.h.bf16 %v2467_v49 }
  0xec   : > { %v2498_v6 = vadd.f32 %v2482_v62, %v2348_v13  ;;  %v2499_v7 = vadd.f32 %v2483_v55, %v2349_v3 }
  0xee   : > { %v2521_v31 = vadd.f32 %v3570_v14, %v2498_v6  ;;  %v2522_v17 = vadd.f32 %v3570_v14, %v2499_v7 }
  0xf0   : > { %v2537_v22 = vmax.f32 %v2521_v31, 0.0  ;;  %v2538_v45 = vmax.f32 %v2522_v17, 0.0 }
  0xf2   : > { %v2546_v58 = vpack.c.bf16 %v2538_v45, %v2537_v22 }
  0xf4   : > { %3478 = vmatmul.mubr.msk.bf16.gmra.mrb[12].mxu1 %vm2567_vm6, %v2546_v58 }
 0x124   : > { %v3487_v9 = vpop.f32.mrb[0].mxu0 }
 0x125   : > { %v2759_v48 = vpop.f32.mrb[1].mxu0 }
 0x126   : > { %v3488_v26 = vpop.f32.mrb[2].mxu0 }
 0x127   : > { %v2762_v46 = vpop.f32.mrb[3].mxu0 }
 0x13a   : > { %v3467_v15 = vpop.f32.mrb[0].mxu1 }
 0x13b   : > { %v2768_v35 = vadd.f32 %v3487_v9, %v3467_v15  ;;  %v2626_v33 = vpop.f32.mrb[1].mxu1 }
 0x13c   : > { %v2760_v42 = vadd.f32 %v2759_v48, %v2626_v33  ;;  %v3468_v1 = vpop.f32.mrb[2].mxu1 }
 0x13d   : > { %v2831_v54 = vadd.f32 %v4695_v37, %v2768_v35  ;;  %v2771_v12 = vadd.f32 %v3488_v26, %v3468_v1  ;;  %v2629_v52 = vpop.f32.mrb[3].mxu1 }
 0x13e   : > { %v2829_v61 = vadd.f32 %v4695_v37, %v2760_v42  ;;  %v2763_v29 = vadd.f32 %v2762_v46, %v2629_v52 }
 0x13f   : > { %v2847_v28 = vmax.f32 %v2831_v54, 0.0  ;;  %v2832_v27 = vadd.f32 %v4695_v37, %v2771_v12 }
 0x140   : > { %v2845_v57 = vmax.f32 %v2829_v61, 0.0  ;;  %v2830_v32 = vadd.f32 %v4695_v37, %v2763_v29 }
 0x141   : > { %v3427_v40 = vpack.c.bf16 %v2847_v28, %v2847_v28  ;;  %v2848_v60 = vmax.f32 %v2832_v27, 0.0  ;;  %v2945_v50 = vsel %vm2567_vm6, %v2847_v28, 0.0 }
 0x142   : > { %v3425_v51 = vpack.c.bf16 %v2845_v57, %v2845_v57  ;;  %v2846_v56 = vmax.f32 %v2830_v32, 0.0  ;;  %v2942_v18 = vsel %vm2567_vm6, %v2845_v57, 0.0 }
 0x143   : > { %2928 = vst.msk [vmem:[%s4704_s1 + $0x8] sm:$0xf] %vm2925_vm7, %v3427_v40  ;;  %v3428_v38 = vpack.c.bf16 %v2848_v60, %v2848_v60  ;;  %v2947_v11 = vsel %vm2567_vm6, %v2848_v60, 0.0 }
 0x144   : > { %2926 = vst.msk [vmem:[%s4704_s1] sm:$0xf] %vm2925_vm7, %v3425_v51  ;;  %v3426_v24 = vpack.c.bf16 %v2846_v56, %v2846_v56  ;;  %v2943_v19 = vsel %vm2567_vm6, %v2846_v56, 0.0 }
 0x145   : > { %2929 = vst.msk [vmem:[%s4704_s1 + $0xc] sm:$0xf] %vm2925_vm7, %v3428_v38  ;;  %v2944_v59 = vadd.f32 %v2943_v19, %v2942_v18 }
 0x146   : > { %2927 = vst.msk [vmem:[%s4704_s1 + $0x4] sm:$0xf] %vm2925_vm7, %v3426_v24 }
 0x147   : > { %v2946_v4 = vadd.f32 %v2945_v50, %v2944_v59 }
 0x149   : > { %v2948_v30 = vadd.f32 %v2947_v11, %v2946_v4 }
 0x153   : > { %v3491_v20 = vpop.f32.mrb[4].mxu0 }
 0x154   : > { %v2775_v5 = vpop.f32.mrb[5].mxu0 }
 0x155   : > { %v3492_v43 = vpop.f32.mrb[6].mxu0 }
 0x156   : > { %v2778_v14 = vpop.f32.mrb[7].mxu0 }
 0x16a   : > { %v3471_v2 = vpop.f32.mrb[4].mxu1 }
 0x16b   : > { %v2784_v39 = vadd.f32 %v3491_v20, %v3471_v2  ;;  %v2642_v16 = vpop.f32.mrb[5].mxu1 }
 0x16c   : > { %v2776_v10 = vadd.f32 %v2775_v5, %v2642_v16  ;;  %v3472_v8 = vpop.f32.mrb[6].mxu1 }
 0x16d   : > { %v2835_v0 = vadd.f32 %v4695_v37, %v2784_v39  ;;  %v2787_v41 = vadd.f32 %v3492_v43, %v3472_v8  ;;  %v2645_v25 = vpop.f32.mrb[7].mxu1 }
 0x16e   : > { %v2833_v34 = vadd.f32 %v4695_v37, %v2776_v10  ;;  %v2779_v63 = vadd.f32 %v2778_v14, %v2645_v25 }
 0x16f   : > { %v2851_v44 = vmax.f32 %v2835_v0, 0.0  ;;  %v2836_v21 = vadd.f32 %v4695_v37, %v2787_v41 }
 0x170   : > { %v2849_v53 = vmax.f32 %v2833_v34, 0.0  ;;  %v2834_v23 = vadd.f32 %v4695_v37, %v2779_v63 }
 0x171   : > { %v3431_v36 = vpack.c.bf16 %v2851_v44, %v2851_v44  ;;  %v2852_v47 = vmax.f32 %v2836_v21, 0.0  ;;  %v2953_v17 = vsel %vm2567_vm6, %v2851_v44, 0.0 }
 0x172   : > { %v3429_v13 = vpack.c.bf16 %v2849_v53, %v2849_v53  ;;  %v2949_v3 = vsel %vm2567_vm6, %v2849_v53, 0.0  ;;  %v2850_v49 = vmax.f32 %v2834_v23, 0.0 }
 0x173   : > { %2932 = vst.msk [vmem:[%s4704_s1 + $0x18] sm:$0xf] %vm2925_vm7, %v3431_v36  ;;  %v2950_v62 = vadd.f32 %v2949_v3, %v2948_v30  ;;  %v3432_v55 = vpack.c.bf16 %v2852_v47, %v2852_v47  ;;  %v2955_v45 = vsel %vm2567_vm6, %v2852_v47, 0.0 }
 0x174   : > { %2930 = vst.msk [vmem:[%s4704_s1 + $0x10] sm:$0xf] %vm2925_vm7, %v3429_v13  ;;  %v3430_v6 = vpack.c.bf16 %v2850_v49, %v2850_v49  ;;  %v2951_v7 = vsel %vm2567_vm6, %v2850_v49, 0.0 }
 0x175   : > { %2933 = vst.msk [vmem:[%s4704_s1 + $0x1c] sm:$0xf] %vm2925_vm7, %v3432_v55  ;;  %v2952_v31 = vadd.f32 %v2951_v7, %v2950_v62 }
 0x176   : > { %2931 = vst.msk [vmem:[%s4704_s1 + $0x14] sm:$0xf] %vm2925_vm7, %v3430_v6 }
 0x177   : > { %v2954_v22 = vadd.f32 %v2953_v17, %v2952_v31 }
 0x179   : > { %v2956_v58 = vadd.f32 %v2955_v45, %v2954_v22 }
 0x180   : > { %v3495_v9 = vpop.f32.mrb[8].mxu0 }
 0x181   : > { %v2791_v48 = vpop.f32.mrb[9].mxu0 }
 0x182   : > { %v3496_v26 = vpop.f32.mrb[10].mxu0 }
 0x183   : > { %v2794_v46 = vpop.f32.mrb[11].mxu0 }
 0x198   : > { %v3475_v15 = vpop.f32.mrb[8].mxu1 }
 0x199   : > { %v2800_v35 = vadd.f32 %v3495_v9, %v3475_v15  ;;  %v2658_v33 = vpop.f32.mrb[9].mxu1 }
 0x19a   : > { %v2792_v42 = vadd.f32 %v2791_v48, %v2658_v33  ;;  %v3476_v1 = vpop.f32.mrb[10].mxu1 }
 0x19b   : > { %v2839_v54 = vadd.f32 %v4695_v37, %v2800_v35  ;;  %v2803_v12 = vadd.f32 %v3496_v26, %v3476_v1  ;;  %v2661_v52 = vpop.f32.mrb[11].mxu1 }
 0x19c   : > { %v2837_v61 = vadd.f32 %v4695_v37, %v2792_v42  ;;  %v2795_v29 = vadd.f32 %v2794_v46, %v2661_v52 }
 0x19d   : > { %v2855_v28 = vmax.f32 %v2839_v54, 0.0  ;;  %v2840_v27 = vadd.f32 %v4695_v37, %v2803_v12 }
 0x19e   : > { %v2853_v57 = vmax.f32 %v2837_v61, 0.0  ;;  %v2838_v32 = vadd.f32 %v4695_v37, %v2795_v29 }
 0x19f   : > { %v3435_v40 = vpack.c.bf16 %v2855_v28, %v2855_v28  ;;  %v2856_v60 = vmax.f32 %v2840_v27, 0.0  ;;  %v2961_v4 = vsel %vm2567_vm6, %v2855_v28, 0.0 }
 0x1a0   : > { %v3433_v51 = vpack.c.bf16 %v2853_v57, %v2853_v57  ;;  %v2957_v56 = vsel %vm2567_vm6, %v2853_v57, 0.0  ;;  %v2854_v38 = vmax.f32 %v2838_v32, 0.0 }
 0x1a1   : > { %2936 = vst.msk [vmem:[%s4704_s1 + $0x28] sm:$0xf] %vm2925_vm7, %v3435_v40  ;;  %v2958_v18 = vadd.f32 %v2957_v56, %v2956_v58  ;;  %v3436_v24 = vpack.c.bf16 %v2856_v60, %v2856_v60  ;;  %v2963_v30 = vsel %vm2567_vm6, %v2856_v60, 0.0 }
 0x1a2   : > { %2934 = vst.msk [vmem:[%s4704_s1 + $0x20] sm:$0xf] %vm2925_vm7, %v3433_v51  ;;  %v3434_v19 = vpack.c.bf16 %v2854_v38, %v2854_v38  ;;  %v2959_v59 = vsel %vm2567_vm6, %v2854_v38, 0.0 }
 0x1a3   : > { %2937 = vst.msk [vmem:[%s4704_s1 + $0x2c] sm:$0xf] %vm2925_vm7, %v3436_v24  ;;  %v2960_v50 = vadd.f32 %v2959_v59, %v2958_v18 }
 0x1a4   : > { %2935 = vst.msk [vmem:[%s4704_s1 + $0x24] sm:$0xf] %vm2925_vm7, %v3434_v19 }
 0x1a5   : > { %v2962_v11 = vadd.f32 %v2961_v4, %v2960_v50 }
 0x1a7   : > { %v2964_v20 = vadd.f32 %v2963_v30, %v2962_v11 }
 0x1af   : > { %v3499_v5 = vpop.f32.mrb[12].mxu0 }
 0x1b0   : > { %v2807_v43 = vpop.f32.mrb[13].mxu0 }
 0x1b1   : > { %v3500_v14 = vpop.f32.mrb[14].mxu0 }
 0x1b2   : > { %v2810_v2 = vpop.f32.mrb[15].mxu0 }
 0x1c7   : > { %v3479_v39 = vpop.f32.mrb[12].mxu1 }
 0x1c8   : > { %v2816_v16 = vadd.f32 %v3499_v5, %v3479_v39  ;;  %v2674_v10 = vpop.f32.mrb[13].mxu1 }
 0x1c9   : > { %v2808_v8 = vadd.f32 %v2807_v43, %v2674_v10  ;;  %v3480_v0 = vpop.f32.mrb[14].mxu1 }
 0x1ca   : > { %v2843_v41 = vadd.f32 %v4695_v37, %v2816_v16  ;;  %v2819_v25 = vadd.f32 %v3500_v14, %v3480_v0  ;;  %v2677_v34 = vpop.f32.mrb[15].mxu1 }
 0x1cb   : > { %v2841_v63 = vadd.f32 %v4695_v37, %v2808_v8  ;;  %v2811_v44 = vadd.f32 %v2810_v2, %v2677_v34 }
 0x1cc   : > { %v2859_v21 = vmax.f32 %v2843_v41, 0.0  ;;  %v2844_v53 = vadd.f32 %v4695_v37, %v2819_v25 }
 0x1cd   : > { %v2857_v23 = vmax.f32 %v2841_v63, 0.0  ;;  %v2842_v36 = vadd.f32 %v4695_v37, %v2811_v44 }
 0x1ce   : > { %v3439_v47 = vpack.c.bf16 %v2859_v21, %v2859_v21  ;;  %v2860_v13 = vmax.f32 %v2844_v53, 0.0  ;;  %v2969_v17 = vsel %vm2567_vm6, %v2859_v21, 0.0 }
 0x1cf   : > { %v3437_v3 = vpack.c.bf16 %v2857_v23, %v2857_v23  ;;  %v2965_v49 = vsel %vm2567_vm6, %v2857_v23, 0.0  ;;  %v2858_v62 = vmax.f32 %v2842_v36, 0.0 }
 0x1d0   : > { %2940 = vst.msk [vmem:[%s4704_s1 + $0x38] sm:$0xf] %vm2925_vm7, %v3439_v47  ;;  %v2966_v55 = vadd.f32 %v2965_v49, %v2964_v20  ;;  %v3440_v6 = vpack.c.bf16 %v2860_v13, %v2860_v13  ;;  %v2971_v45 = vsel %vm2567_vm6, %v2860_v13, 0.0 }
 0x1d1   : > { %2938 = vst.msk [vmem:[%s4704_s1 + $0x30] sm:$0xf] %vm2925_vm7, %v3437_v3  ;;  %v3438_v7 = vpack.c.bf16 %v2858_v62, %v2858_v62  ;;  %v2967_v31 = vsel %vm2567_vm6, %v2858_v62, 0.0 }
 0x1d2   : > { %2941 = vst.msk [vmem:[%s4704_s1 + $0x3c] sm:$0xf] %vm2925_vm7, %v3440_v6  ;;  %v2968_v37 = vadd.f32 %v2967_v31, %v2966_v55 }
 0x1d3   : > { %2939 = vst.msk [vmem:[%s4704_s1 + $0x34] sm:$0xf] %vm2925_vm7, %v3438_v7 }
 0x1d4   : > { %v2970_v22 = vadd.f32 %v2969_v17, %v2968_v37 }
 0x1d6   : > { %v2972_v58 = vadd.f32 %v2971_v45, %v2970_v22 }
 0x1d8   : > { %v2973_v9 = vrot.slane %v2972_v58, 4 }
 0x1da   : > { %v2974_v48 = vadd.f32 %v2973_v9, %v2972_v58 }
 0x1dc   : > { %v2975_v26 = vrot.slane %v2974_v48, 2 }
 0x1de   : > { %v2976_v46 = vadd.f32 %v2975_v26, %v2974_v48 }
 0x1e0   : > { %v2977_v15 = vrot.slane %v2976_v46, 1 }
 0x1e2   : > { %v2978_v35 = vadd.f32 %v2977_v15, %v2976_v46 }
 0x1e4   : > { %2979 = vst.msk [vmem:[%s1113_s10] sm:$0xff] %vm2567_vm6, %v2978_v35 }
 0x1e5 PF: > { %s25_s17 = sadd.s32 1, %s3609_s17   ;;  %s4854_s27 = sld [smem:[#allocation2_spill]] }
 0x1e6   : > { %p22_p1 = scmp.ge.s32.totalorder %s25_s17, 6   ;;  %s4855_s29 = smov %s3601_s15 }
 0x1e7   : > { %s4856_s30 = smov %s3605_s16  ;;  %s4857_s15 = smov %s4860_s18 }
 0x1e8   :  { %24 = sbr.rel (!%p22_p1) target bundleno = 5 (0x5), region = 129 }
 0x1eb   : > { %s4858_s16 = smov %s4854_s27 }

</bundles_post_ra>
